<compile_context>
chip_gen: v7x
topology: tpu7x:2x2x1
jax: 0.10.0
libtpu: 0.0.40
codegen_flags: <defaults>
</compile_context>

<pallas_src>
import jax
import jax.numpy as jnp
from jax.experimental import pallas as pl
from jax.experimental.pallas import tpu as pltpu


# ----------------------------------------------------------------------------
# Fused kernel: conv1+ReLU -> conv2 -> flatten -> fc1+ReLU -> fc2+ReLU -> fc3+ReLU
# ----------------------------------------------------------------------------
def number_net_kernel(x_ref, c1w_ref, c1b_ref, c2w_ref, c2b_ref,
                      w1_ref, b1_ref, w2_ref, b2_ref, w3_ref, b3_ref,
                      out_ref, flat_ref):
    # x_ref  : (1, 28, 28)   f32  VMEM   one image per grid step
    # c1w_ref: (12,)         f32  SMEM   flat (out_c, kh, kw), in_c == 1
    # c1b_ref: (3,)          f32  SMEM
    # c2w_ref: (27,)         f32  SMEM   flat (in_c, kh, kw), out_c == 1
    # c2b_ref: (1,)          f32  SMEM
    # w1_ref : (640, 128)    bf16 VMEM   fc1 weight, row i*25+j; rows 625.. zero
    # b1_ref : (1, 128)      f32  VMEM
    # w2_ref : (128, 64)     bf16 VMEM
    # b2_ref : (1, 64)       f32  VMEM
    # w3_ref : (64, 128)     bf16 VMEM   zero-padded 10 -> 128 on the out dim
    # b3_ref : (1, 128)      f32  VMEM   zero-padded
    # out_ref: (1, 1, 128)   f32  VMEM   lane-dense; logits live in [0, :10]
    # flat_ref:(1, 640)      f32  VMEM   scratch: row-major flattened conv_out
    x = x_ref[0]                                             # (28, 28)

    # ---- conv1 (2x2, 1 -> 3) + ReLU : shifted scalar-broadcast MACs (VPU) ----
    # Shifted views hoisted out of the channel loop (4 slices, reused 3x).
    xs = [[x[di:di + 27, dj:dj + 27] for dj in range(2)] for di in range(2)]
    hidden = []
    for c in range(3):
        acc = jnp.full((27, 27), c1b_ref[c], dtype=jnp.float32)
        for di in range(2):
            for dj in range(2):
                acc = acc + c1w_ref[c * 4 + di * 2 + dj] * xs[di][dj]
        hidden.append(jnp.maximum(acc, 0.0))

    # ---- conv2 (3x3, 3 -> 1), no ReLU ----
    conv_out = jnp.full((25, 25), c2b_ref[0], dtype=jnp.float32)
    for c in range(3):
        for di in range(3):
            for dj in range(3):
                conv_out = conv_out + (
                    c2w_ref[c * 9 + di * 3 + dj] * hidden[c][di:di + 25, dj:dj + 25])

    # ---- flatten: write the 25 rows row-major into the (1, 640) scratch ------
    # flat[i*25 + j] = conv_out[i, j]  (matches torch's row-major .view(1, -1));
    # lanes 625..639 stay zero and hit zero rows of w1.
    flat_ref[...] = jnp.zeros((1, 640), dtype=jnp.float32)
    for i in range(25):
        flat_ref[0:1, i * 25:i * 25 + 25] = conv_out[i:i + 1, :]

    flat_bf16 = flat_ref[...].astype(jnp.bfloat16)           # (1, 640)

    # ---- fc1: single K=640 MXU dot (bf16 operands, f32 accumulation) + ReLU --
    h1 = jnp.maximum(
        jnp.dot(flat_bf16, w1_ref[...], preferred_element_type=jnp.float32)
        + b1_ref[...],
        0.0)

    # ---- fc2 + ReLU ----
    h2 = jnp.maximum(
        jnp.dot(h1.astype(jnp.bfloat16), w2_ref[...],
                preferred_element_type=jnp.float32) + b2_ref[...],
        0.0)

    # ---- fc3 + ReLU (lane-dense padded output) ----
    out_ref[0] = jnp.maximum(
        jnp.dot(h2.astype(jnp.bfloat16), w3_ref[...],
                preferred_element_type=jnp.float32) + b3_ref[...],
        0.0)


_VMEM = pl.BlockSpec(memory_space=pltpu.MemorySpace.VMEM)
_SMEM = pl.BlockSpec(memory_space=pltpu.MemorySpace.SMEM)

_FLOPS_PER_IMAGE = (3 * 27 * 27 * 4 * 2      # conv1
                    + 25 * 25 * 27 * 2       # conv2
                    + 640 * 128 * 2          # fc1 (padded K)
                    + 128 * 64 * 2           # fc2
                    + 64 * 128 * 2)          # fc3 (padded out)
_WEIGHT_BYTES = (2 * (640 * 128 + 128 * 64 + 64 * 128)   # bf16 fc weights
                 + 4 * (128 + 64 + 128)                  # f32 fc biases
                 + 4 * (12 + 3 + 27 + 1))                # f32 conv scalars
_PER_IMAGE_BYTES = 4 * (28 * 28 + 128)                   # x in, padded out


def fused_forward(x_nhw, kp):
    """x_nhw: (N, 28, 28) f32, N independent single-channel images -> (N, 10)."""
    n = x_nhw.shape[0]
    out_pad = pl.pallas_call(
        number_net_kernel,
        out_shape=jax.ShapeDtypeStruct((n, 1, 128), jnp.float32),
        grid=(n,),
        in_specs=[
            pl.BlockSpec((1, 28, 28), lambda i: (i, 0, 0)),   # per-image tile
            _SMEM, _SMEM, _SMEM, _SMEM,                       # conv scalars
            _VMEM, _VMEM, _VMEM, _VMEM, _VMEM, _VMEM,         # fc weights/biases
        ],
        out_specs=pl.BlockSpec((1, 1, 128), lambda i: (i, 0, 0)),
        scratch_shapes=[pltpu.VMEM((1, 640), jnp.float32)],
        compiler_params=pltpu.CompilerParams(
            dimension_semantics=("parallel",)),
        cost_estimate=pl.CostEstimate(
            flops=n * _FLOPS_PER_IMAGE, transcendentals=0,
            bytes_accessed=_WEIGHT_BYTES + n * _PER_IMAGE_BYTES),
    )(x_nhw,
      kp["c1_w"], kp["c1_b"], kp["c2_w"], kp["c2_b"],
      kp["f1_w"], kp["f1_b"], kp["f2_w"], kp["f2_b"], kp["f3_w"], kp["f3_b"])
    return out_pad[:, 0, :10]


@jax.jit
def number_net_forward(x, packed_params):
    # x: (1, 28, 28) f32 (C=1, H=28, W=28); the module's forward() adds the
    # batch dim itself, so the single leading unit axis maps to one image.
    return fused_forward(x, packed_params)


@jax.jit
def number_net_forward_batch(x_nhw, packed_params):
    # (N, 28, 28): N images pipelined through one pallas_call; weights are
    # DMA'd once and the image axis shards across TensorCores on v7x.
    return fused_forward(x_nhw, packed_params)


# ----------------------------------------------------------------------------
# Parameter handling
# ----------------------------------------------------------------------------
def init_params(key):
    """PyTorch-default-style init (uniform +/- 1/sqrt(fan_in)), logical layout."""
    ks = jax.random.split(key, 10)

    def u(k, shape, fan_in):
        bound = 1.0 / jnp.sqrt(float(fan_in))
        return jax.random.uniform(k, shape, jnp.float32, -bound, bound)

    return {
        # conv1: Conv2d(1, 3, (2,2)) -> weight (3, 1, 2, 2) squeezed to (3, 2, 2)
        "c1_w": u(ks[0], (3, 2, 2), 1 * 2 * 2),
        "c1_b": u(ks[1], (3,), 1 * 2 * 2),
        # conv2: Conv2d(3, 1, (3,3)) -> weight (1, 3, 3, 3) squeezed to (3, 3, 3)
        "c2_w": u(ks[2], (3, 3, 3), 3 * 3 * 3),
        "c2_b": u(ks[3], (1,), 3 * 3 * 3),
        # Linear weights stored pre-transposed as (in, out); y = x @ W + b.
        # (A real torch state_dict weight (out, in) must be transposed first.)
        "f1_w": u(ks[4], (625, 128), 625),
        "f1_b": u(ks[5], (1, 128), 625),
        "f2_w": u(ks[6], (128, 64), 128),
        "f2_b": u(ks[7], (1, 64), 128),
        "f3_w": u(ks[8], (64, 10), 64),
        "f3_b": u(ks[9], (1, 10), 64),
    }


def pack_params(p):
    """One-time repack into the kernel-facing layout (done at weight-prep time).

    fc weights go to bf16 (exact f32 parity with the PyTorch module is traded
    for ~1e-3 error; accumulation stays f32 in-kernel)."""
    return {
        "c1_w": p["c1_w"].reshape(-1),                              # (12,)  SMEM
        "c1_b": p["c1_b"],                                          # (3,)   SMEM
        "c2_w": p["c2_w"].reshape(-1),                              # (27,)  SMEM
        "c2_b": p["c2_b"],                                          # (1,)   SMEM
        # (625,128) -> (640,128): tile-aligned, rows 625..639 zero; row k is
        # W1[k, :] with k = i*25 + j, matching the kernel's row-major flatten.
        "f1_w": jnp.pad(p["f1_w"], ((0, 15), (0, 0))).astype(jnp.bfloat16),
        "f1_b": p["f1_b"],
        "f2_w": p["f2_w"].astype(jnp.bfloat16),
        "f2_b": p["f2_b"],
        "f3_w": jnp.pad(p["f3_w"], ((0, 0), (0, 118))).astype(jnp.bfloat16),
        "f3_b": jnp.pad(p["f3_b"], ((0, 0), (0, 118))),             # (1, 128)
    }


# ----------------------------------------------------------------------------
# Pure-JAX f32 reference (independent code path) for the correctness check.
# ----------------------------------------------------------------------------
def reference_forward(x, p):
    xb = x[None]                                             # (1, 1, 28, 28)
    h = jax.lax.conv_general_dilated(
        xb, p["c1_w"][:, None, :, :], (1, 1), "VALID",
        dimension_numbers=("NCHW", "OIHW", "NCHW"))
    h = jnp.maximum(h + p["c1_b"][None, :, None, None], 0.0)
    c = jax.lax.conv_general_dilated(
        h, p["c2_w"][None, :, :, :], (1, 1), "VALID",
        dimension_numbers=("NCHW", "OIHW", "NCHW"))
    c = c + p["c2_b"][None, :, None, None]
    flat = c.reshape(1, -1)
    h1 = jnp.maximum(flat @ p["f1_w"] + p["f1_b"], 0.0)
    h2 = jnp.maximum(h1 @ p["f2_w"] + p["f2_b"], 0.0)
    return jnp.maximum(h2 @ p["f3_w"] + p["f3_b"], 0.0)


if __name__ == "__main__":
    key = jax.random.PRNGKey(0)
    k_x, k_p, k_b = jax.random.split(key, 3)
    params = init_params(k_p)
    packed = pack_params(params)

    # --- single image (exact module semantics: x is (C=1, 28, 28)) ---
    x = jax.random.normal(k_x, (1, 28, 28), dtype=jnp.float32)
    out = jax.block_until_ready(number_net_forward(x, packed))
    assert out.shape == (1, 10), out.shape
    assert bool(jnp.all(jnp.isfinite(out)))
    assert bool(jnp.all(out >= 0.0))                         # final ReLU
    ref = reference_forward(x, params)
    assert bool(jnp.allclose(out, ref, rtol=1e-2, atol=1e-2)), (out, ref)

    # --- batched demo: grid over images, weights DMA'd once ---
    xb = jax.random.normal(k_b, (8, 28, 28), dtype=jnp.float32)
    outb = jax.block_until_ready(number_net_forward_batch(xb, packed))
    assert outb.shape == (8, 10), outb.shape
    assert bool(jnp.all(jnp.isfinite(outb)))
    assert bool(jnp.all(outb >= 0.0))
    refb = jnp.concatenate(
        [reference_forward(xb[i:i + 1], params) for i in range(8)], axis=0)
    assert bool(jnp.allclose(outb, refb, rtol=1e-2, atol=1e-2)), (outb, refb)

    print("KERNEL_OK")
</pallas_src>

<mosaic_0001>
module attributes {stable_mosaic.version = 11 : i64} {
  func.func @number_net_kernel(%arg0: i32, %arg1: memref<1x28x28xf32, #tpu.memory_space<vmem>>, %arg2: memref<12xf32, #tpu.memory_space<smem>>, %arg3: memref<3xf32, #tpu.memory_space<smem>>, %arg4: memref<27xf32, #tpu.memory_space<smem>>, %arg5: memref<1xf32, #tpu.memory_space<smem>>, %arg6: memref<640x128xbf16, #tpu.memory_space<vmem>>, %arg7: memref<1x128xf32, #tpu.memory_space<vmem>>, %arg8: memref<128x64xbf16, #tpu.memory_space<vmem>>, %arg9: memref<1x64xf32, #tpu.memory_space<vmem>>, %arg10: memref<64x128xbf16, #tpu.memory_space<vmem>>, %arg11: memref<1x128xf32, #tpu.memory_space<vmem>>, %arg12: memref<1x1x128xf32, #tpu.memory_space<vmem>>, %arg13: memref<1x640xf32, #tpu.memory_space<vmem>>) attributes {dimension_semantics = [#tpu.dimension_semantics<parallel>], iteration_bounds = array<i64: 1>, scalar_prefetch = 0 : i64, scratch_operands = 1 : i64, tpu.core_type = #tpu.core_type<tc>, window_params = [{transform_indices = @transform_0, window_bounds = array<i64: 1, 28, 28>}, {transform_indices = @transform_1, window_bounds = array<i64: 12>}, {transform_indices = @transform_2, window_bounds = array<i64: 3>}, {transform_indices = @transform_3, window_bounds = array<i64: 27>}, {transform_indices = @transform_4, window_bounds = array<i64: 1>}, {pipeline_mode = #tpu.pipeline_mode<synchronous>, transform_indices = @transform_5, window_bounds = array<i64: 640, 128>}, {pipeline_mode = #tpu.pipeline_mode<synchronous>, transform_indices = @transform_6, window_bounds = array<i64: 1, 128>}, {pipeline_mode = #tpu.pipeline_mode<synchronous>, transform_indices = @transform_7, window_bounds = array<i64: 128, 64>}, {pipeline_mode = #tpu.pipeline_mode<synchronous>, transform_indices = @transform_8, window_bounds = array<i64: 1, 64>}, {pipeline_mode = #tpu.pipeline_mode<synchronous>, transform_indices = @transform_9, window_bounds = array<i64: 64, 128>}, {pipeline_mode = #tpu.pipeline_mode<synchronous>, transform_indices = @transform_10, window_bounds = array<i64: 1, 128>}, {transform_indices = @transform_11, window_bounds = array<i64: 1, 1, 128>}]} {
    %c0 = arith.constant 0 : index
    %c0_0 = arith.constant 0 : index
    %c0_1 = arith.constant 0 : index
    %0 = vector.load %arg1[%c0, %c0_0, %c0_1] : memref<1x28x28xf32, #tpu.memory_space<vmem>>, vector<1x28x28xf32>
    %1 = vector.shape_cast %0 : vector<1x28x28xf32> to vector<28x28xf32>
    %2 = vector.extract_strided_slice %1 {offsets = [0, 0], sizes = [27, 27], strides = [1, 1]} : vector<28x28xf32> to vector<27x27xf32>
    %3 = vector.extract_strided_slice %1 {offsets = [0, 1], sizes = [27, 27], strides = [1, 1]} : vector<28x28xf32> to vector<27x27xf32>
    %4 = vector.extract_strided_slice %1 {offsets = [1, 0], sizes = [27, 27], strides = [1, 1]} : vector<28x28xf32> to vector<27x27xf32>
    %5 = vector.extract_strided_slice %1 {offsets = [1, 1], sizes = [27, 27], strides = [1, 1]} : vector<28x28xf32> to vector<27x27xf32>
    %c0_2 = arith.constant 0 : index
    %6 = memref.load %arg3[%c0_2] : memref<3xf32, #tpu.memory_space<smem>>
    %7 = vector.broadcast %6 : f32 to vector<27x27xf32>
    %c0_3 = arith.constant 0 : index
    %8 = memref.load %arg2[%c0_3] : memref<12xf32, #tpu.memory_space<smem>>
    %9 = vector.broadcast %8 : f32 to vector<27x27xf32>
    %10 = arith.mulf %9, %2 : vector<27x27xf32>
    %11 = arith.addf %7, %10 : vector<27x27xf32>
    %c1 = arith.constant 1 : index
    %12 = memref.load %arg2[%c1] : memref<12xf32, #tpu.memory_space<smem>>
    %13 = vector.broadcast %12 : f32 to vector<27x27xf32>
    %14 = arith.mulf %13, %3 : vector<27x27xf32>
    %15 = arith.addf %11, %14 : vector<27x27xf32>
    %c2 = arith.constant 2 : index
    %16 = memref.load %arg2[%c2] : memref<12xf32, #tpu.memory_space<smem>>
    %17 = vector.broadcast %16 : f32 to vector<27x27xf32>
    %18 = arith.mulf %17, %4 : vector<27x27xf32>
    %19 = arith.addf %15, %18 : vector<27x27xf32>
    %c3 = arith.constant 3 : index
    %20 = memref.load %arg2[%c3] : memref<12xf32, #tpu.memory_space<smem>>
    %21 = vector.broadcast %20 : f32 to vector<27x27xf32>
    %22 = arith.mulf %21, %5 : vector<27x27xf32>
    %23 = arith.addf %19, %22 : vector<27x27xf32>
    %cst = arith.constant 0.000000e+00 : f32
    %24 = vector.broadcast %cst : f32 to vector<27x27xf32>
    %25 = arith.maximumf %23, %24 : vector<27x27xf32>
    %c1_4 = arith.constant 1 : index
    %26 = memref.load %arg3[%c1_4] : memref<3xf32, #tpu.memory_space<smem>>
    %27 = vector.broadcast %26 : f32 to vector<27x27xf32>
    %c4 = arith.constant 4 : index
    %28 = memref.load %arg2[%c4] : memref<12xf32, #tpu.memory_space<smem>>
    %29 = vector.broadcast %28 : f32 to vector<27x27xf32>
    %30 = arith.mulf %29, %2 : vector<27x27xf32>
    %31 = arith.addf %27, %30 : vector<27x27xf32>
    %c5 = arith.constant 5 : index
    %32 = memref.load %arg2[%c5] : memref<12xf32, #tpu.memory_space<smem>>
    %33 = vector.broadcast %32 : f32 to vector<27x27xf32>
    %34 = arith.mulf %33, %3 : vector<27x27xf32>
    %35 = arith.addf %31, %34 : vector<27x27xf32>
    %c6 = arith.constant 6 : index
    %36 = memref.load %arg2[%c6] : memref<12xf32, #tpu.memory_space<smem>>
    %37 = vector.broadcast %36 : f32 to vector<27x27xf32>
    %38 = arith.mulf %37, %4 : vector<27x27xf32>
    %39 = arith.addf %35, %38 : vector<27x27xf32>
    %c7 = arith.constant 7 : index
    %40 = memref.load %arg2[%c7] : memref<12xf32, #tpu.memory_space<smem>>
    %41 = vector.broadcast %40 : f32 to vector<27x27xf32>
    %42 = arith.mulf %41, %5 : vector<27x27xf32>
    %43 = arith.addf %39, %42 : vector<27x27xf32>
    %cst_5 = arith.constant 0.000000e+00 : f32
    %44 = vector.broadcast %cst_5 : f32 to vector<27x27xf32>
    %45 = arith.maximumf %43, %44 : vector<27x27xf32>
    %c2_6 = arith.constant 2 : index
    %46 = memref.load %arg3[%c2_6] : memref<3xf32, #tpu.memory_space<smem>>
    %47 = vector.broadcast %46 : f32 to vector<27x27xf32>
    %c8 = arith.constant 8 : index
    %48 = memref.load %arg2[%c8] : memref<12xf32, #tpu.memory_space<smem>>
    %49 = vector.broadcast %48 : f32 to vector<27x27xf32>
    %50 = arith.mulf %49, %2 : vector<27x27xf32>
    %51 = arith.addf %47, %50 : vector<27x27xf32>
    %c9 = arith.constant 9 : index
    %52 = memref.load %arg2[%c9] : memref<12xf32, #tpu.memory_space<smem>>
    %53 = vector.broadcast %52 : f32 to vector<27x27xf32>
    %54 = arith.mulf %53, %3 : vector<27x27xf32>
    %55 = arith.addf %51, %54 : vector<27x27xf32>
    %c10 = arith.constant 10 : index
    %56 = memref.load %arg2[%c10] : memref<12xf32, #tpu.memory_space<smem>>
    %57 = vector.broadcast %56 : f32 to vector<27x27xf32>
    %58 = arith.mulf %57, %4 : vector<27x27xf32>
    %59 = arith.addf %55, %58 : vector<27x27xf32>
    %c11 = arith.constant 11 : index
    %60 = memref.load %arg2[%c11] : memref<12xf32, #tpu.memory_space<smem>>
    %61 = vector.broadcast %60 : f32 to vector<27x27xf32>
    %62 = arith.mulf %61, %5 : vector<27x27xf32>
    %63 = arith.addf %59, %62 : vector<27x27xf32>
    %cst_7 = arith.constant 0.000000e+00 : f32
    %64 = vector.broadcast %cst_7 : f32 to vector<27x27xf32>
    %65 = arith.maximumf %63, %64 : vector<27x27xf32>
    %c0_8 = arith.constant 0 : index
    %66 = memref.load %arg5[%c0_8] : memref<1xf32, #tpu.memory_space<smem>>
    %67 = vector.broadcast %66 : f32 to vector<25x25xf32>
    %c0_9 = arith.constant 0 : index
    %68 = memref.load %arg4[%c0_9] : memref<27xf32, #tpu.memory_space<smem>>
    %69 = vector.extract_strided_slice %25 {offsets = [0, 0], sizes = [25, 25], strides = [1, 1]} : vector<27x27xf32> to vector<25x25xf32>
    %70 = vector.broadcast %68 : f32 to vector<25x25xf32>
    %71 = arith.mulf %70, %69 : vector<25x25xf32>
    %72 = arith.addf %67, %71 : vector<25x25xf32>
    %c1_10 = arith.constant 1 : index
    %73 = memref.load %arg4[%c1_10] : memref<27xf32, #tpu.memory_space<smem>>
    %74 = vector.extract_strided_slice %25 {offsets = [0, 1], sizes = [25, 25], strides = [1, 1]} : vector<27x27xf32> to vector<25x25xf32>
    %75 = vector.broadcast %73 : f32 to vector<25x25xf32>
    %76 = arith.mulf %75, %74 : vector<25x25xf32>
    %77 = arith.addf %72, %76 : vector<25x25xf32>
    %c2_11 = arith.constant 2 : index
    %78 = memref.load %arg4[%c2_11] : memref<27xf32, #tpu.memory_space<smem>>
    %79 = vector.extract_strided_slice %25 {offsets = [0, 2], sizes = [25, 25], strides = [1, 1]} : vector<27x27xf32> to vector<25x25xf32>
    %80 = vector.broadcast %78 : f32 to vector<25x25xf32>
    %81 = arith.mulf %80, %79 : vector<25x25xf32>
    %82 = arith.addf %77, %81 : vector<25x25xf32>
    %c3_12 = arith.constant 3 : index
    %83 = memref.load %arg4[%c3_12] : memref<27xf32, #tpu.memory_space<smem>>
    %84 = vector.extract_strided_slice %25 {offsets = [1, 0], sizes = [25, 25], strides = [1, 1]} : vector<27x27xf32> to vector<25x25xf32>
    %85 = vector.broadcast %83 : f32 to vector<25x25xf32>
    %86 = arith.mulf %85, %84 : vector<25x25xf32>
    %87 = arith.addf %82, %86 : vector<25x25xf32>
    %c4_13 = arith.constant 4 : index
    %88 = memref.load %arg4[%c4_13] : memref<27xf32, #tpu.memory_space<smem>>
    %89 = vector.extract_strided_slice %25 {offsets = [1, 1], sizes = [25, 25], strides = [1, 1]} : vector<27x27xf32> to vector<25x25xf32>
    %90 = vector.broadcast %88 : f32 to vector<25x25xf32>
    %91 = arith.mulf %90, %89 : vector<25x25xf32>
    %92 = arith.addf %87, %91 : vector<25x25xf32>
    %c5_14 = arith.constant 5 : index
    %93 = memref.load %arg4[%c5_14] : memref<27xf32, #tpu.memory_space<smem>>
    %94 = vector.extract_strided_slice %25 {offsets = [1, 2], sizes = [25, 25], strides = [1, 1]} : vector<27x27xf32> to vector<25x25xf32>
    %95 = vector.broadcast %93 : f32 to vector<25x25xf32>
    %96 = arith.mulf %95, %94 : vector<25x25xf32>
    %97 = arith.addf %92, %96 : vector<25x25xf32>
    %c6_15 = arith.constant 6 : index
    %98 = memref.load %arg4[%c6_15] : memref<27xf32, #tpu.memory_space<smem>>
    %99 = vector.extract_strided_slice %25 {offsets = [2, 0], sizes = [25, 25], strides = [1, 1]} : vector<27x27xf32> to vector<25x25xf32>
    %100 = vector.broadcast %98 : f32 to vector<25x25xf32>
    %101 = arith.mulf %100, %99 : vector<25x25xf32>
    %102 = arith.addf %97, %101 : vector<25x25xf32>
    %c7_16 = arith.constant 7 : index
    %103 = memref.load %arg4[%c7_16] : memref<27xf32, #tpu.memory_space<smem>>
    %104 = vector.extract_strided_slice %25 {offsets = [2, 1], sizes = [25, 25], strides = [1, 1]} : vector<27x27xf32> to vector<25x25xf32>
    %105 = vector.broadcast %103 : f32 to vector<25x25xf32>
    %106 = arith.mulf %105, %104 : vector<25x25xf32>
    %107 = arith.addf %102, %106 : vector<25x25xf32>
    %c8_17 = arith.constant 8 : index
    %108 = memref.load %arg4[%c8_17] : memref<27xf32, #tpu.memory_space<smem>>
    %109 = vector.extract_strided_slice %25 {offsets = [2, 2], sizes = [25, 25], strides = [1, 1]} : vector<27x27xf32> to vector<25x25xf32>
    %110 = vector.broadcast %108 : f32 to vector<25x25xf32>
    %111 = arith.mulf %110, %109 : vector<25x25xf32>
    %112 = arith.addf %107, %111 : vector<25x25xf32>
    %c9_18 = arith.constant 9 : index
    %113 = memref.load %arg4[%c9_18] : memref<27xf32, #tpu.memory_space<smem>>
    %114 = vector.extract_strided_slice %45 {offsets = [0, 0], sizes = [25, 25], strides = [1, 1]} : vector<27x27xf32> to vector<25x25xf32>
    %115 = vector.broadcast %113 : f32 to vector<25x25xf32>
    %116 = arith.mulf %115, %114 : vector<25x25xf32>
    %117 = arith.addf %112, %116 : vector<25x25xf32>
    %c10_19 = arith.constant 10 : index
    %118 = memref.load %arg4[%c10_19] : memref<27xf32, #tpu.memory_space<smem>>
    %119 = vector.extract_strided_slice %45 {offsets = [0, 1], sizes = [25, 25], strides = [1, 1]} : vector<27x27xf32> to vector<25x25xf32>
    %120 = vector.broadcast %118 : f32 to vector<25x25xf32>
    %121 = arith.mulf %120, %119 : vector<25x25xf32>
    %122 = arith.addf %117, %121 : vector<25x25xf32>
    %c11_20 = arith.constant 11 : index
    %123 = memref.load %arg4[%c11_20] : memref<27xf32, #tpu.memory_space<smem>>
    %124 = vector.extract_strided_slice %45 {offsets = [0, 2], sizes = [25, 25], strides = [1, 1]} : vector<27x27xf32> to vector<25x25xf32>
    %125 = vector.broadcast %123 : f32 to vector<25x25xf32>
    %126 = arith.mulf %125, %124 : vector<25x25xf32>
    %127 = arith.addf %122, %126 : vector<25x25xf32>
    %c12 = arith.constant 12 : index
    %128 = memref.load %arg4[%c12] : memref<27xf32, #tpu.memory_space<smem>>
    %129 = vector.extract_strided_slice %45 {offsets = [1, 0], sizes = [25, 25], strides = [1, 1]} : vector<27x27xf32> to vector<25x25xf32>
    %130 = vector.broadcast %128 : f32 to vector<25x25xf32>
    %131 = arith.mulf %130, %129 : vector<25x25xf32>
    %132 = arith.addf %127, %131 : vector<25x25xf32>
    %c13 = arith.constant 13 : index
    %133 = memref.load %arg4[%c13] : memref<27xf32, #tpu.memory_space<smem>>
    %134 = vector.extract_strided_slice %45 {offsets = [1, 1], sizes = [25, 25], strides = [1, 1]} : vector<27x27xf32> to vector<25x25xf32>
    %135 = vector.broadcast %133 : f32 to vector<25x25xf32>
    %136 = arith.mulf %135, %134 : vector<25x25xf32>
    %137 = arith.addf %132, %136 : vector<25x25xf32>
    %c14 = arith.constant 14 : index
    %138 = memref.load %arg4[%c14] : memref<27xf32, #tpu.memory_space<smem>>
    %139 = vector.extract_strided_slice %45 {offsets = [1, 2], sizes = [25, 25], strides = [1, 1]} : vector<27x27xf32> to vector<25x25xf32>
    %140 = vector.broadcast %138 : f32 to vector<25x25xf32>
    %141 = arith.mulf %140, %139 : vector<25x25xf32>
    %142 = arith.addf %137, %141 : vector<25x25xf32>
    %c15 = arith.constant 15 : index
    %143 = memref.load %arg4[%c15] : memref<27xf32, #tpu.memory_space<smem>>
    %144 = vector.extract_strided_slice %45 {offsets = [2, 0], sizes = [25, 25], strides = [1, 1]} : vector<27x27xf32> to vector<25x25xf32>
    %145 = vector.broadcast %143 : f32 to vector<25x25xf32>
    %146 = arith.mulf %145, %144 : vector<25x25xf32>
    %147 = arith.addf %142, %146 : vector<25x25xf32>
    %c16 = arith.constant 16 : index
    %148 = memref.load %arg4[%c16] : memref<27xf32, #tpu.memory_space<smem>>
    %149 = vector.extract_strided_slice %45 {offsets = [2, 1], sizes = [25, 25], strides = [1, 1]} : vector<27x27xf32> to vector<25x25xf32>
    %150 = vector.broadcast %148 : f32 to vector<25x25xf32>
    %151 = arith.mulf %150, %149 : vector<25x25xf32>
    %152 = arith.addf %147, %151 : vector<25x25xf32>
    %c17 = arith.constant 17 : index
    %153 = memref.load %arg4[%c17] : memref<27xf32, #tpu.memory_space<smem>>
    %154 = vector.extract_strided_slice %45 {offsets = [2, 2], sizes = [25, 25], strides = [1, 1]} : vector<27x27xf32> to vector<25x25xf32>
    %155 = vector.broadcast %153 : f32 to vector<25x25xf32>
    %156 = arith.mulf %155, %154 : vector<25x25xf32>
    %157 = arith.addf %152, %156 : vector<25x25xf32>
    %c18 = arith.constant 18 : index
    %158 = memref.load %arg4[%c18] : memref<27xf32, #tpu.memory_space<smem>>
    %159 = vector.extract_strided_slice %65 {offsets = [0, 0], sizes = [25, 25], strides = [1, 1]} : vector<27x27xf32> to vector<25x25xf32>
    %160 = vector.broadcast %158 : f32 to vector<25x25xf32>
    %161 = arith.mulf %160, %159 : vector<25x25xf32>
    %162 = arith.addf %157, %161 : vector<25x25xf32>
    %c19 = arith.constant 19 : index
    %163 = memref.load %arg4[%c19] : memref<27xf32, #tpu.memory_space<smem>>
    %164 = vector.extract_strided_slice %65 {offsets = [0, 1], sizes = [25, 25], strides = [1, 1]} : vector<27x27xf32> to vector<25x25xf32>
    %165 = vector.broadcast %163 : f32 to vector<25x25xf32>
    %166 = arith.mulf %165, %164 : vector<25x25xf32>
    %167 = arith.addf %162, %166 : vector<25x25xf32>
    %c20 = arith.constant 20 : index
    %168 = memref.load %arg4[%c20] : memref<27xf32, #tpu.memory_space<smem>>
    %169 = vector.extract_strided_slice %65 {offsets = [0, 2], sizes = [25, 25], strides = [1, 1]} : vector<27x27xf32> to vector<25x25xf32>
    %170 = vector.broadcast %168 : f32 to vector<25x25xf32>
    %171 = arith.mulf %170, %169 : vector<25x25xf32>
    %172 = arith.addf %167, %171 : vector<25x25xf32>
    %c21 = arith.constant 21 : index
    %173 = memref.load %arg4[%c21] : memref<27xf32, #tpu.memory_space<smem>>
    %174 = vector.extract_strided_slice %65 {offsets = [1, 0], sizes = [25, 25], strides = [1, 1]} : vector<27x27xf32> to vector<25x25xf32>
    %175 = vector.broadcast %173 : f32 to vector<25x25xf32>
    %176 = arith.mulf %175, %174 : vector<25x25xf32>
    %177 = arith.addf %172, %176 : vector<25x25xf32>
    %c22 = arith.constant 22 : index
    %178 = memref.load %arg4[%c22] : memref<27xf32, #tpu.memory_space<smem>>
    %179 = vector.extract_strided_slice %65 {offsets = [1, 1], sizes = [25, 25], strides = [1, 1]} : vector<27x27xf32> to vector<25x25xf32>
    %180 = vector.broadcast %178 : f32 to vector<25x25xf32>
    %181 = arith.mulf %180, %179 : vector<25x25xf32>
    %182 = arith.addf %177, %181 : vector<25x25xf32>
    %c23 = arith.constant 23 : index
    %183 = memref.load %arg4[%c23] : memref<27xf32, #tpu.memory_space<smem>>
    %184 = vector.extract_strided_slice %65 {offsets = [1, 2], sizes = [25, 25], strides = [1, 1]} : vector<27x27xf32> to vector<25x25xf32>
    %185 = vector.broadcast %183 : f32 to vector<25x25xf32>
    %186 = arith.mulf %185, %184 : vector<25x25xf32>
    %187 = arith.addf %182, %186 : vector<25x25xf32>
    %c24 = arith.constant 24 : index
    %188 = memref.load %arg4[%c24] : memref<27xf32, #tpu.memory_space<smem>>
    %189 = vector.extract_strided_slice %65 {offsets = [2, 0], sizes = [25, 25], strides = [1, 1]} : vector<27x27xf32> to vector<25x25xf32>
    %190 = vector.broadcast %188 : f32 to vector<25x25xf32>
    %191 = arith.mulf %190, %189 : vector<25x25xf32>
    %192 = arith.addf %187, %191 : vector<25x25xf32>
    %c25 = arith.constant 25 : index
    %193 = memref.load %arg4[%c25] : memref<27xf32, #tpu.memory_space<smem>>
    %194 = vector.extract_strided_slice %65 {offsets = [2, 1], sizes = [25, 25], strides = [1, 1]} : vector<27x27xf32> to vector<25x25xf32>
    %195 = vector.broadcast %193 : f32 to vector<25x25xf32>
    %196 = arith.mulf %195, %194 : vector<25x25xf32>
    %197 = arith.addf %192, %196 : vector<25x25xf32>
    %c26 = arith.constant 26 : index
    %198 = memref.load %arg4[%c26] : memref<27xf32, #tpu.memory_space<smem>>
    %199 = vector.extract_strided_slice %65 {offsets = [2, 2], sizes = [25, 25], strides = [1, 1]} : vector<27x27xf32> to vector<25x25xf32>
    %200 = vector.broadcast %198 : f32 to vector<25x25xf32>
    %201 = arith.mulf %200, %199 : vector<25x25xf32>
    %202 = arith.addf %197, %201 : vector<25x25xf32>
    %cst_21 = arith.constant 0.000000e+00 : f32
    %203 = vector.broadcast %cst_21 : f32 to vector<1x640xf32>
    %c0_22 = arith.constant 0 : index
    %c0_23 = arith.constant 0 : index
    %204 = vector.load %arg13[%c0_22, %c0_23] : memref<1x640xf32, #tpu.memory_space<vmem>>, vector<1x640xf32>
    tpu.vector_store %arg13[%c0_22, %c0_23], %203 {strides = array<i32>} : memref<1x640xf32, #tpu.memory_space<vmem>>, vector<1x640xf32>,
    %205 = vector.extract_strided_slice %202 {offsets = [0, 0], sizes = [1, 25], strides = [1, 1]} : vector<25x25xf32> to vector<1x25xf32>
    %c0_24 = arith.constant 0 : index
    %c0_25 = arith.constant 0 : index
    %206 = vector.load %arg13[%c0_24, %c0_25] : memref<1x640xf32, #tpu.memory_space<vmem>>, vector<1x25xf32>
    tpu.vector_store %arg13[%c0_24, %c0_25], %205 {strides = array<i32>} : memref<1x640xf32, #tpu.memory_space<vmem>>, vector<1x25xf32>,
    %207 = vector.extract_strided_slice %202 {offsets = [1, 0], sizes = [1, 25], strides = [1, 1]} : vector<25x25xf32> to vector<1x25xf32>
    %c0_26 = arith.constant 0 : index
    %c25_27 = arith.constant 25 : index
    %208 = vector.load %arg13[%c0_26, %c25_27] : memref<1x640xf32, #tpu.memory_space<vmem>>, vector<1x25xf32>
    tpu.vector_store %arg13[%c0_26, %c25_27], %207 {strides = array<i32>} : memref<1x640xf32, #tpu.memory_space<vmem>>, vector<1x25xf32>,
    %209 = vector.extract_strided_slice %202 {offsets = [2, 0], sizes = [1, 25], strides = [1, 1]} : vector<25x25xf32> to vector<1x25xf32>
    %c0_28 = arith.constant 0 : index
    %c50 = arith.constant 50 : index
    %210 = vector.load %arg13[%c0_28, %c50] : memref<1x640xf32, #tpu.memory_space<vmem>>, vector<1x25xf32>
    tpu.vector_store %arg13[%c0_28, %c50], %209 {strides = array<i32>} : memref<1x640xf32, #tpu.memory_space<vmem>>, vector<1x25xf32>,
    %211 = vector.extract_strided_slice %202 {offsets = [3, 0], sizes = [1, 25], strides = [1, 1]} : vector<25x25xf32> to vector<1x25xf32>
    %c0_29 = arith.constant 0 : index
    %c75 = arith.constant 75 : index
    %212 = vector.load %arg13[%c0_29, %c75] : memref<1x640xf32, #tpu.memory_space<vmem>>, vector<1x25xf32>
    tpu.vector_store %arg13[%c0_29, %c75], %211 {strides = array<i32>} : memref<1x640xf32, #tpu.memory_space<vmem>>, vector<1x25xf32>,
    %213 = vector.extract_strided_slice %202 {offsets = [4, 0], sizes = [1, 25], strides = [1, 1]} : vector<25x25xf32> to vector<1x25xf32>
    %c0_30 = arith.constant 0 : index
    %c100 = arith.constant 100 : index
    %214 = vector.load %arg13[%c0_30, %c100] : memref<1x640xf32, #tpu.memory_space<vmem>>, vector<1x25xf32>
    tpu.vector_store %arg13[%c0_30, %c100], %213 {strides = array<i32>} : memref<1x640xf32, #tpu.memory_space<vmem>>, vector<1x25xf32>,
    %215 = vector.extract_strided_slice %202 {offsets = [5, 0], sizes = [1, 25], strides = [1, 1]} : vector<25x25xf32> to vector<1x25xf32>
    %c0_31 = arith.constant 0 : index
    %c125 = arith.constant 125 : index
    %216 = vector.load %arg13[%c0_31, %c125] : memref<1x640xf32, #tpu.memory_space<vmem>>, vector<1x25xf32>
    tpu.vector_store %arg13[%c0_31, %c125], %215 {strides = array<i32>} : memref<1x640xf32, #tpu.memory_space<vmem>>, vector<1x25xf32>,
    %217 = vector.extract_strided_slice %202 {offsets = [6, 0], sizes = [1, 25], strides = [1, 1]} : vector<25x25xf32> to vector<1x25xf32>
    %c0_32 = arith.constant 0 : index
    %c150 = arith.constant 150 : index
    %218 = vector.load %arg13[%c0_32, %c150] : memref<1x640xf32, #tpu.memory_space<vmem>>, vector<1x25xf32>
    tpu.vector_store %arg13[%c0_32, %c150], %217 {strides = array<i32>} : memref<1x640xf32, #tpu.memory_space<vmem>>, vector<1x25xf32>,
    %219 = vector.extract_strided_slice %202 {offsets = [7, 0], sizes = [1, 25], strides = [1, 1]} : vector<25x25xf32> to vector<1x25xf32>
    %c0_33 = arith.constant 0 : index
    %c175 = arith.constant 175 : index
    %220 = vector.load %arg13[%c0_33, %c175] : memref<1x640xf32, #tpu.memory_space<vmem>>, vector<1x25xf32>
    tpu.vector_store %arg13[%c0_33, %c175], %219 {strides = array<i32>} : memref<1x640xf32, #tpu.memory_space<vmem>>, vector<1x25xf32>,
    %221 = vector.extract_strided_slice %202 {offsets = [8, 0], sizes = [1, 25], strides = [1, 1]} : vector<25x25xf32> to vector<1x25xf32>
    %c0_34 = arith.constant 0 : index
    %c200 = arith.constant 200 : index
    %222 = vector.load %arg13[%c0_34, %c200] : memref<1x640xf32, #tpu.memory_space<vmem>>, vector<1x25xf32>
    tpu.vector_store %arg13[%c0_34, %c200], %221 {strides = array<i32>} : memref<1x640xf32, #tpu.memory_space<vmem>>, vector<1x25xf32>,
    %223 = vector.extract_strided_slice %202 {offsets = [9, 0], sizes = [1, 25], strides = [1, 1]} : vector<25x25xf32> to vector<1x25xf32>
    %c0_35 = arith.constant 0 : index
    %c225 = arith.constant 225 : index
    %224 = vector.load %arg13[%c0_35, %c225] : memref<1x640xf32, #tpu.memory_space<vmem>>, vector<1x25xf32>
    tpu.vector_store %arg13[%c0_35, %c225], %223 {strides = array<i32>} : memref<1x640xf32, #tpu.memory_space<vmem>>, vector<1x25xf32>,
    %225 = vector.extract_strided_slice %202 {offsets = [10, 0], sizes = [1, 25], strides = [1, 1]} : vector<25x25xf32> to vector<1x25xf32>
    %c0_36 = arith.constant 0 : index
    %c250 = arith.constant 250 : index
    %226 = vector.load %arg13[%c0_36, %c250] : memref<1x640xf32, #tpu.memory_space<vmem>>, vector<1x25xf32>
    tpu.vector_store %arg13[%c0_36, %c250], %225 {strides = array<i32>} : memref<1x640xf32, #tpu.memory_space<vmem>>, vector<1x25xf32>,
    %227 = vector.extract_strided_slice %202 {offsets = [11, 0], sizes = [1, 25], strides = [1, 1]} : vector<25x25xf32> to vector<1x25xf32>
    %c0_37 = arith.constant 0 : index
    %c275 = arith.constant 275 : index
    %228 = vector.load %arg13[%c0_37, %c275] : memref<1x640xf32, #tpu.memory_space<vmem>>, vector<1x25xf32>
    tpu.vector_store %arg13[%c0_37, %c275], %227 {strides = array<i32>} : memref<1x640xf32, #tpu.memory_space<vmem>>, vector<1x25xf32>,
    %229 = vector.extract_strided_slice %202 {offsets = [12, 0], sizes = [1, 25], strides = [1, 1]} : vector<25x25xf32> to vector<1x25xf32>
    %c0_38 = arith.constant 0 : index
    %c300 = arith.constant 300 : index
    %230 = vector.load %arg13[%c0_38, %c300] : memref<1x640xf32, #tpu.memory_space<vmem>>, vector<1x25xf32>
    tpu.vector_store %arg13[%c0_38, %c300], %229 {strides = array<i32>} : memref<1x640xf32, #tpu.memory_space<vmem>>, vector<1x25xf32>,
    %231 = vector.extract_strided_slice %202 {offsets = [13, 0], sizes = [1, 25], strides = [1, 1]} : vector<25x25xf32> to vector<1x25xf32>
    %c0_39 = arith.constant 0 : index
    %c325 = arith.constant 325 : index
    %232 = vector.load %arg13[%c0_39, %c325] : memref<1x640xf32, #tpu.memory_space<vmem>>, vector<1x25xf32>
    tpu.vector_store %arg13[%c0_39, %c325], %231 {strides = array<i32>} : memref<1x640xf32, #tpu.memory_space<vmem>>, vector<1x25xf32>,
    %233 = vector.extract_strided_slice %202 {offsets = [14, 0], sizes = [1, 25], strides = [1, 1]} : vector<25x25xf32> to vector<1x25xf32>
    %c0_40 = arith.constant 0 : index
    %c350 = arith.constant 350 : index
    %234 = vector.load %arg13[%c0_40, %c350] : memref<1x640xf32, #tpu.memory_space<vmem>>, vector<1x25xf32>
    tpu.vector_store %arg13[%c0_40, %c350], %233 {strides = array<i32>} : memref<1x640xf32, #tpu.memory_space<vmem>>, vector<1x25xf32>,
    %235 = vector.extract_strided_slice %202 {offsets = [15, 0], sizes = [1, 25], strides = [1, 1]} : vector<25x25xf32> to vector<1x25xf32>
    %c0_41 = arith.constant 0 : index
    %c375 = arith.constant 375 : index
    %236 = vector.load %arg13[%c0_41, %c375] : memref<1x640xf32, #tpu.memory_space<vmem>>, vector<1x25xf32>
    tpu.vector_store %arg13[%c0_41, %c375], %235 {strides = array<i32>} : memref<1x640xf32, #tpu.memory_space<vmem>>, vector<1x25xf32>,
    %237 = vector.extract_strided_slice %202 {offsets = [16, 0], sizes = [1, 25], strides = [1, 1]} : vector<25x25xf32> to vector<1x25xf32>
    %c0_42 = arith.constant 0 : index
    %c400 = arith.constant 400 : index
    %238 = vector.load %arg13[%c0_42, %c400] : memref<1x640xf32, #tpu.memory_space<vmem>>, vector<1x25xf32>
    tpu.vector_store %arg13[%c0_42, %c400], %237 {strides = array<i32>} : memref<1x640xf32, #tpu.memory_space<vmem>>, vector<1x25xf32>,
    %239 = vector.extract_strided_slice %202 {offsets = [17, 0], sizes = [1, 25], strides = [1, 1]} : vector<25x25xf32> to vector<1x25xf32>
    %c0_43 = arith.constant 0 : index
    %c425 = arith.constant 425 : index
    %240 = vector.load %arg13[%c0_43, %c425] : memref<1x640xf32, #tpu.memory_space<vmem>>, vector<1x25xf32>
    tpu.vector_store %arg13[%c0_43, %c425], %239 {strides = array<i32>} : memref<1x640xf32, #tpu.memory_space<vmem>>, vector<1x25xf32>,
    %241 = vector.extract_strided_slice %202 {offsets = [18, 0], sizes = [1, 25], strides = [1, 1]} : vector<25x25xf32> to vector<1x25xf32>
    %c0_44 = arith.constant 0 : index
    %c450 = arith.constant 450 : index
    %242 = vector.load %arg13[%c0_44, %c450] : memref<1x640xf32, #tpu.memory_space<vmem>>, vector<1x25xf32>
    tpu.vector_store %arg13[%c0_44, %c450], %241 {strides = array<i32>} : memref<1x640xf32, #tpu.memory_space<vmem>>, vector<1x25xf32>,
    %243 = vector.extract_strided_slice %202 {offsets = [19, 0], sizes = [1, 25], strides = [1, 1]} : vector<25x25xf32> to vector<1x25xf32>
    %c0_45 = arith.constant 0 : index
    %c475 = arith.constant 475 : index
    %244 = vector.load %arg13[%c0_45, %c475] : memref<1x640xf32, #tpu.memory_space<vmem>>, vector<1x25xf32>
    tpu.vector_store %arg13[%c0_45, %c475], %243 {strides = array<i32>} : memref<1x640xf32, #tpu.memory_space<vmem>>, vector<1x25xf32>,
    %245 = vector.extract_strided_slice %202 {offsets = [20, 0], sizes = [1, 25], strides = [1, 1]} : vector<25x25xf32> to vector<1x25xf32>
    %c0_46 = arith.constant 0 : index
    %c500 = arith.constant 500 : index
    %246 = vector.load %arg13[%c0_46, %c500] : memref<1x640xf32, #tpu.memory_space<vmem>>, vector<1x25xf32>
    tpu.vector_store %arg13[%c0_46, %c500], %245 {strides = array<i32>} : memref<1x640xf32, #tpu.memory_space<vmem>>, vector<1x25xf32>,
    %247 = vector.extract_strided_slice %202 {offsets = [21, 0], sizes = [1, 25], strides = [1, 1]} : vector<25x25xf32> to vector<1x25xf32>
    %c0_47 = arith.constant 0 : index
    %c525 = arith.constant 525 : index
    %248 = vector.load %arg13[%c0_47, %c525] : memref<1x640xf32, #tpu.memory_space<vmem>>, vector<1x25xf32>
    tpu.vector_store %arg13[%c0_47, %c525], %247 {strides = array<i32>} : memref<1x640xf32, #tpu.memory_space<vmem>>, vector<1x25xf32>,
    %249 = vector.extract_strided_slice %202 {offsets = [22, 0], sizes = [1, 25], strides = [1, 1]} : vector<25x25xf32> to vector<1x25xf32>
    %c0_48 = arith.constant 0 : index
    %c550 = arith.constant 550 : index
    %250 = vector.load %arg13[%c0_48, %c550] : memref<1x640xf32, #tpu.memory_space<vmem>>, vector<1x25xf32>
    tpu.vector_store %arg13[%c0_48, %c550], %249 {strides = array<i32>} : memref<1x640xf32, #tpu.memory_space<vmem>>, vector<1x25xf32>,
    %251 = vector.extract_strided_slice %202 {offsets = [23, 0], sizes = [1, 25], strides = [1, 1]} : vector<25x25xf32> to vector<1x25xf32>
    %c0_49 = arith.constant 0 : index
    %c575 = arith.constant 575 : index
    %252 = vector.load %arg13[%c0_49, %c575] : memref<1x640xf32, #tpu.memory_space<vmem>>, vector<1x25xf32>
    tpu.vector_store %arg13[%c0_49, %c575], %251 {strides = array<i32>} : memref<1x640xf32, #tpu.memory_space<vmem>>, vector<1x25xf32>,
    %253 = vector.extract_strided_slice %202 {offsets = [24, 0], sizes = [1, 25], strides = [1, 1]} : vector<25x25xf32> to vector<1x25xf32>
    %c0_50 = arith.constant 0 : index
    %c600 = arith.constant 600 : index
    %254 = vector.load %arg13[%c0_50, %c600] : memref<1x640xf32, #tpu.memory_space<vmem>>, vector<1x25xf32>
    tpu.vector_store %arg13[%c0_50, %c600], %253 {strides = array<i32>} : memref<1x640xf32, #tpu.memory_space<vmem>>, vector<1x25xf32>,
    %c0_51 = arith.constant 0 : index
    %c0_52 = arith.constant 0 : index
    %255 = vector.load %arg13[%c0_51, %c0_52] : memref<1x640xf32, #tpu.memory_space<vmem>>, vector<1x640xf32>
    %256 = arith.truncf %255 : vector<1x640xf32> to vector<1x640xbf16>
    %c0_53 = arith.constant 0 : index
    %c0_54 = arith.constant 0 : index
    %257 = vector.load %arg6[%c0_53, %c0_54] : memref<640x128xbf16, #tpu.memory_space<vmem>>, vector<640x128xbf16>
    %cst_55 = arith.constant dense<0.000000e+00> : vector<1x128xf32>
    %258 = tpu.matmul %256, %257, %cst_55 {dimension_numbers = #tpu.dot_dimension_numbers<[1], [0], [0], [1], [0, 0, 1, 1], [], []>} : vector<1x640xbf16>, vector<640x128xbf16>, vector<1x128xf32> -> vector<1x128xf32>
    %c0_56 = arith.constant 0 : index
    %c0_57 = arith.constant 0 : index
    %259 = vector.load %arg7[%c0_56, %c0_57] : memref<1x128xf32, #tpu.memory_space<vmem>>, vector<1x128xf32>
    %260 = arith.addf %258, %259 : vector<1x128xf32>
    %cst_58 = arith.constant 0.000000e+00 : f32
    %261 = vector.broadcast %cst_58 : f32 to vector<1x128xf32>
    %262 = arith.maximumf %260, %261 : vector<1x128xf32>
    %263 = arith.truncf %262 : vector<1x128xf32> to vector<1x128xbf16>
    %c0_59 = arith.constant 0 : index
    %c0_60 = arith.constant 0 : index
    %264 = vector.load %arg8[%c0_59, %c0_60] : memref<128x64xbf16, #tpu.memory_space<vmem>>, vector<128x64xbf16>
    %cst_61 = arith.constant dense<0.000000e+00> : vector<1x64xf32>
    %265 = tpu.matmul %263, %264, %cst_61 {dimension_numbers = #tpu.dot_dimension_numbers<[1], [0], [0], [1], [0, 0, 1, 1], [], []>} : vector<1x128xbf16>, vector<128x64xbf16>, vector<1x64xf32> -> vector<1x64xf32>
    %c0_62 = arith.constant 0 : index
    %c0_63 = arith.constant 0 : index
    %266 = vector.load %arg9[%c0_62, %c0_63] : memref<1x64xf32, #tpu.memory_space<vmem>>, vector<1x64xf32>
    %267 = arith.addf %265, %266 : vector<1x64xf32>
    %cst_64 = arith.constant 0.000000e+00 : f32
    %268 = vector.broadcast %cst_64 : f32 to vector<1x64xf32>
    %269 = arith.maximumf %267, %268 : vector<1x64xf32>
    %270 = arith.truncf %269 : vector<1x64xf32> to vector<1x64xbf16>
    %c0_65 = arith.constant 0 : index
    %c0_66 = arith.constant 0 : index
    %271 = vector.load %arg10[%c0_65, %c0_66] : memref<64x128xbf16, #tpu.memory_space<vmem>>, vector<64x128xbf16>
    %cst_67 = arith.constant dense<0.000000e+00> : vector<1x128xf32>
    %272 = tpu.matmul %270, %271, %cst_67 {dimension_numbers = #tpu.dot_dimension_numbers<[1], [0], [0], [1], [0, 0, 1, 1], [], []>} : vector<1x64xbf16>, vector<64x128xbf16>, vector<1x128xf32> -> vector<1x128xf32>
    %c0_68 = arith.constant 0 : index
    %c0_69 = arith.constant 0 : index
    %273 = vector.load %arg11[%c0_68, %c0_69] : memref<1x128xf32, #tpu.memory_space<vmem>>, vector<1x128xf32>
    %274 = arith.addf %272, %273 : vector<1x128xf32>
    %cst_70 = arith.constant 0.000000e+00 : f32
    %275 = vector.broadcast %cst_70 : f32 to vector<1x128xf32>
    %276 = arith.maximumf %274, %275 : vector<1x128xf32>
    %c0_71 = arith.constant 0 : index
    %c0_72 = arith.constant 0 : index
    %c0_73 = arith.constant 0 : index
    %277 = vector.load %arg12[%c0_71, %c0_72, %c0_73] : memref<1x1x128xf32, #tpu.memory_space<vmem>>, vector<1x1x128xf32>
    %278 = vector.shape_cast %277 : vector<1x1x128xf32> to vector<1x128xf32>
    %279 = vector.shape_cast %276 : vector<1x128xf32> to vector<1x1x128xf32>
    tpu.vector_store %arg12[%c0_71, %c0_72, %c0_73], %279 {strides = array<i32>} : memref<1x1x128xf32, #tpu.memory_space<vmem>>, vector<1x1x128xf32>,
    return
  }
  func.func @transform_0(%arg0: i32) -> (i32, i32, i32) {
    %c0_i32 = arith.constant 0 : i32
    %c0_i32_0 = arith.constant 0 : i32
    %c0_i32_1 = arith.constant 0 : i32
    return %arg0, %c0_i32, %c0_i32_0 : i32, i32, i32
  }
  func.func @transform_1(%arg0: i32) -> i32 {
    %c0_i32 = arith.constant 0 : i32
    %c0_i32_0 = arith.constant 0 : i32
    return %c0_i32 : i32
  }
  func.func @transform_2(%arg0: i32) -> i32 {
    %c0_i32 = arith.constant 0 : i32
    %c0_i32_0 = arith.constant 0 : i32
    return %c0_i32 : i32
  }
  func.func @transform_3(%arg0: i32) -> i32 {
    %c0_i32 = arith.constant 0 : i32
    %c0_i32_0 = arith.constant 0 : i32
    return %c0_i32 : i32
  }
  func.func @transform_4(%arg0: i32) -> i32 {
    %c0_i32 = arith.constant 0 : i32
    %c0_i32_0 = arith.constant 0 : i32
    return %c0_i32 : i32
  }
  func.func @transform_5(%arg0: i32) -> (i32, i32) {
    %c0_i32 = arith.constant 0 : i32
    %c0_i32_0 = arith.constant 0 : i32
    %c0_i32_1 = arith.constant 0 : i32
    return %c0_i32, %c0_i32_0 : i32, i32
  }
  func.func @transform_6(%arg0: i32) -> (i32, i32) {
    %c0_i32 = arith.constant 0 : i32
    %c0_i32_0 = arith.constant 0 : i32
    %c0_i32_1 = arith.constant 0 : i32
    return %c0_i32, %c0_i32_0 : i32, i32
  }
  func.func @transform_7(%arg0: i32) -> (i32, i32) {
    %c0_i32 = arith.constant 0 : i32
    %c0_i32_0 = arith.constant 0 : i32
    %c0_i32_1 = arith.constant 0 : i32
    return %c0_i32, %c0_i32_0 : i32, i32
  }
  func.func @transform_8(%arg0: i32) -> (i32, i32) {
    %c0_i32 = arith.constant 0 : i32
    %c0_i32_0 = arith.constant 0 : i32
    %c0_i32_1 = arith.constant 0 : i32
    return %c0_i32, %c0_i32_0 : i32, i32
  }
  func.func @transform_9(%arg0: i32) -> (i32, i32) {
    %c0_i32 = arith.constant 0 : i32
    %c0_i32_0 = arith.constant 0 : i32
    %c0_i32_1 = arith.constant 0 : i32
    return %c0_i32, %c0_i32_0 : i32, i32
  }
  func.func @transform_10(%arg0: i32) -> (i32, i32) {
    %c0_i32 = arith.constant 0 : i32
    %c0_i32_0 = arith.constant 0 : i32
    %c0_i32_1 = arith.constant 0 : i32
    return %c0_i32, %c0_i32_0 : i32, i32
  }
  func.func @transform_11(%arg0: i32) -> (i32, i32, i32) {
    %c0_i32 = arith.constant 0 : i32
    %c0_i32_0 = arith.constant 0 : i32
    %c0_i32_1 = arith.constant 0 : i32
    return %arg0, %c0_i32, %c0_i32_0 : i32, i32, i32
  }
}

</mosaic_0001>

<bundles_post_ra>
// kernel: number_net_forward.1
= control target key start
LH: loop header
LB: loop body
LE: loop exit
PB: predicated region body
PF: predicated region fallthrough
CT: control target
= control target key end

     0   :  { %17 = vsyncpa [#allocation6], 0  ;;  %s4153_s0 = inlined_call_operand.vmem [shape: f32[1,28,28], index: 0, kind: input, shape index: {}]   ;;  %s4154_s1 = inlined_call_operand.vmem [shape: f32[12], index: 1, kind: input, shape index: {}]   ;;  %s4155_s2 = inlined_call_operand.vmem [shape: f32[3], index: 2, kind: input, shape index: {}]   ;;  %s4156_s3 = inlined_call_operand.vmem [shape: f32[27], index: 3, kind: input, shape index: {}]   ;;  %s4157_s4 = inlined_call_operand.<no memory space> [shape: f32[1], index: 4, kind: input, shape index: {}]   ;;  %s4158_s5 = inlined_call_operand.hbm [shape: bf16[640,128], index: 5, kind: input, shape index: {}]   ;;  %s4159_s6 = inlined_call_operand.vmem [shape: f32[1,128], index: 6, kind: input, shape index: {}]   ;;  %s4160_s7 = inlined_call_operand.vmem [shape: bf16[128,64], index: 7, kind: input, shape index: {}]   ;;  %s4161_s8 = inlined_call_operand.vmem [shape: f32[1,64], index: 8, kind: input, shape index: {}]   ;;  %s4162_s9 = inlined_call_operand.vmem [shape: bf16[64,128], index: 9, kind: input, shape index: {}]   ;;  %s4163_s10 = inlined_call_operand.vmem [shape: f32[1,128], index: 10, kind: input, shape index: {}]   ;;  %s4164_s11 = inlined_call_operand.vmem [shape: f32[1,1,128], index: 11, kind: output, shape index: {}]  }
   0x1   :  { %18 = vsyncpa [#allocation8], 0  ;;  %s38_s19 = sshll.u32 %s4155_s2, 4  ;;  %s39_s19 = int_to_ptr.vmem [resolvable:$true] %s38_s19 }
   0x2   :  { %19 = vsyncpa [#allocation5], 0  ;;  %s28_s22 = sshll.u32 %s4154_s1, 4  ;;  %s2449_s23 = scalar_lea.vmem %s39_s19, 16  ;;  %s29_s22 = int_to_ptr.vmem [resolvable:$true] %s28_s22 }
   0x3   :  { %p2450_p0 = scmp.ne.s32.totalorder %s39_s19, %s2449_s23  ;;  %p2454_p1 = scmp.lt.s32.totalorder %s39_s19, %s39_s19 }
   0x4   :  { %p2455_p2 = scmp.lt.s32.totalorder %s2449_s23, %s2449_s23 }
   0x6   :  { %p2456_p3 = por %p2455_p2, %p2454_p1 }
   0x8   :  { %p2457_p4 = pnand %p2456_p3, %p2450_p0 }
   0xa   :  { %2460 = shalt.err (!%p2457_p4)
}
   0xb   :  { %s2513_s24 = smov [#allocation7]   ;;  %s2461_s25 = scalar_lea.vmem %s29_s22, 16 }
   0xc   :  { %41 = dma.vmem_to_smem %s39_s19, 16, %s2513_s24, [#allocation8]  }
   0xd   :  { %p2462_p5 = scmp.ne.s32.totalorder %s29_s22, %s2461_s25  ;;  %p2466_p6 = scmp.lt.s32.totalorder %s29_s22, %s29_s22 }
   0xe   :  { %p2467_p7 = scmp.lt.s32.totalorder %s2461_s25, %s2461_s25 }
  0x10   :  { %p2468_p8 = por %p2467_p7, %p2466_p6 }
  0x12   :  { %p2469_p9 = pnand %p2468_p8, %p2462_p5 }
  0x14   :  { %2472 = shalt.err (!%p2469_p9)
}
  0x15   :  { %s2514_s2 = smov [#allocation4]   ;;  %s48_s27 = sshll.u32 %s4156_s3, 4  ;;  %s49_s27 = int_to_ptr.vmem [resolvable:$true] %s48_s27 }
  0x16   :  { %31 = dma.vmem_to_smem %s29_s22, 16, %s2514_s2, [#allocation6]  }
  0x17   :  { %s2473_s28 = scalar_lea.vmem %s49_s27, 16  ;;  %p2478_p11 = scmp.lt.s32.totalorder %s49_s27, %s49_s27 }
  0x18   :  { %p2474_p10 = scmp.ne.s32.totalorder %s49_s27, %s2473_s28  ;;  %p2479_p12 = scmp.lt.s32.totalorder %s2473_s28, %s2473_s28 }
  0x1a   :  { %p2480_p13 = por %p2479_p12, %p2478_p11 }
  0x1c   :  { %p2481_p0 = pnand %p2480_p13, %p2474_p10 }
  0x1e   :  { %2484 = shalt.err (!%p2481_p0)
}
  0x1f   :  { %s2515_s29 = smov [#allocation9]   ;;  %s2516_s30 = smov [#allocation10]  }
  0x20   :  { %51 = dma.vmem_to_smem %s49_s27, 16, %s2515_s29, [#allocation8]  }
  0x21   :  { %s59_s12 = sshll.u32 %s2516_s30, 4  ;;  %s2485_s15 = scalar_lea.hbm %s4158_s5, 5120  ;;  %s60_s12 = int_to_ptr.vmem [resolvable:$true] %s59_s12 }
  0x22   :  { %p2486_p1 = scmp.ne.s32.totalorder %s4158_s5, %s2485_s15  ;;  %p2489_p2 = scmp.lt.u32.totalorder %s2485_s15, %s4158_s5 }
  0x24   :  { %p2491_p3 = pnand %p2489_p2, %p2486_p1 }
  0x26   :  { %2494 = shalt.err (!%p2491_p3)
}
  0x27   :  { %s2495_s19 = scalar_lea.vmem %s60_s12, 5120  ;;  %p2500_p5 = scmp.lt.s32.totalorder %s60_s12, %s60_s12 }
  0x28   :  { %p2496_p4 = scmp.ne.s32.totalorder %s60_s12, %s2495_s19  ;;  %p2501_p6 = scmp.lt.s32.totalorder %s2495_s19, %s2495_s19 }
  0x2a   :  { %p2502_p7 = por %p2501_p6, %p2500_p5 }
  0x2c   :  { %p2503_p8 = pnand %p2502_p7, %p2496_p4 }
  0x2e   :  { %2506 = shalt.err (!%p2503_p8)
}
  0x2f   :  { %s2517_s20 = smov 64   ;;  %s2518_s21 = smov 4  }
  0x30   :  { %65 = dma.hbm_to_vmem [thread:$0]  %s4158_s5, 5120, %s60_s12, [#allocation5], %s2517_s20, %s2517_s20, %s2518_s21  }
  0x31   :  { %2507 = dma.done.wait [#allocation6], 16  }
  0x32   :  { %2508 = vsyncadd [#allocation6], 4294967280 }
  0x33   :  { %2509 = dma.done.wait [#allocation8], 32  }
  0x34   :  { %2510 = vsyncadd [#allocation8], 4294967264 }
  0x35   :  { %2511 = dma.done.wait [#allocation5], 5120  }
  0x36   :  { %2512 = vsyncadd [#allocation5], 4294962176 }
  0x37   :  { %88 = sfence }
  0x38   :  { %s2151_s24 = sld [smem:[#allocation4 + $0x1]]  ;;  %s2153_s25 = sld [smem:[#allocation4 + $0x3]]  ;;  %v2632_v0 = vld [vmem:[%s4153_s0 + $0x18] sm:$0xf]  ;;  %v2637_v1 = vld [vmem:[%s4153_s0] sm:$0xff]  ;;  %v2642_v2 = vld [vmem:[%s4153_s0 + $0x8] sm:$0xff] }
  0x39   :  { %s2158_s2 = sld [smem:[#allocation4 + $0x7]]  ;;  %v2647_v3 = vld [vmem:[%s4153_s0 + $0x10] sm:$0xff]  ;;  %s2156_s13 = sld [smem:[#allocation4 + $0x5]]  ;;  %vm142_vm0 = vcmask 1046528   ;;  %vm560_vm1 = vcmask 1045504  }
  0x3a   :  { %s2519_s14 = smov 127   ;;  %s2152_s0 = sld [smem:[#allocation4 + $0x2]] }
  0x3b   :  { %s2666_s15 = sld [smem:[#allocation4 + $0x9]]  ;;  %s2163_s16 = sld [smem:[#allocation4 + $0xb]] }
  0x3c   :  { %s2157_s17 = sld [smem:[#allocation4 + $0x6]]  ;;  %s2672_s3 = sld [smem:[#allocation4 + $0xa]] }
  0x3d   :  { %s2160_s18 = sld [smem:[#allocation4 + $0x8]]  ;;  %s2159_s19 = sld [smem:[#allocation7 + $0x2]] }
  0x3e   :  { %v107_v4 = vstv %s2151_s24  ;;  %v159_v7 = vstv %s2153_s25  ;;  %s96_s20 = sld [smem:[#allocation4]]  ;;  %s2155_s22 = sld [smem:[#allocation4 + $0x4]] }
  0x3f   :  { %v111_v5 = vmul.f32 %v107_v4, %v2632_v0  ;;  %v108_v6 = vmul.f32 %v107_v4, %v2637_v1  ;;  %v160_v8 = vmul.f32 %v159_v7, %v2637_v1  ;;  %v161_v9 = vmul.f32 %v159_v7, %v2642_v2  ;;  %s94_s21 = sld [smem:[#allocation7]]  ;;  %s2154_s23 = sld [smem:[#allocation7 + $0x1]] }
  0x40   :  { %v162_v10 = vmul.f32 %v159_v7, %v2647_v3  ;;  %v109_v11 = vmul.f32 %v107_v4, %v2642_v2  ;;  %v163_v12 = vmul.f32 %v159_v7, %v2632_v0  ;;  %v259_v16 = vstv %s2158_s2  ;;  %s2165_s24 = sld [smem:[#allocation9 + $0x2]]  ;;  %s2786_s25 = sld [smem:[#allocation9 + $0x1]] }
  0x41   :  { %122 = vrot.lane.b32.xlu1 %v111_v5, %s2519_s14  ;;  %116 = vrot.lane.b32.xlu0 %v108_v6, %s2519_s14  ;;  %v168_v13 = vrot.slane %v160_v8, 1  ;;  %v169_v14 = vrot.slane %v161_v9, 1  ;;  %v110_v18 = vmul.f32 %v107_v4, %v2647_v3  ;;  %v208_v20 = vstv %s2156_s13  ;;  %s2789_s2 = sld [smem:[#allocation9 + $0xa]]  ;;  %s2791_s1 = sld [smem:[#allocation9 + $0xb]] }
  0x42   :  { %v171_v15 = vrot.slane %v162_v10, 1  ;;  %v173_v19 = vrot.slane %v163_v12, 1  ;;  %v260_v22 = vmul.f32 %v259_v16, %v2637_v1  ;;  %v261_v23 = vmul.f32 %v259_v16, %v2642_v2  ;;  %s2799_s26 = sld [smem:[#allocation9 + $0x5]]  ;;  %s2801_s27 = sld [smem:[#allocation9 + $0x4]] }
  0x43   :  { %v170_v17 = vsel %vm142_vm0, %v168_v13, %v169_v14  ;;  %v262_v24 = vmul.f32 %v259_v16, %v2647_v3  ;;  %v209_v25 = vmul.f32 %v208_v20, %v2637_v1  ;;  %v2674_v30 = vstv %s2152_s0  ;;  %s2805_s28 = sld [smem:[#allocation9 + $0x8]]  ;;  %s2807_s5 = sld [smem:[#allocation9 + $0x7]] }
  0x44   :  { %v172_v21 = vsel %vm142_vm0, %v169_v14, %v171_v15  ;;  %v174_v26 = vsel %vm142_vm0, %v171_v15, %v173_v19  ;;  %v268_v27 = vrot.slane %v260_v22, 1  ;;  %v269_v28 = vrot.slane %v261_v23, 1  ;;  %s2816_s29 = sld [smem:[#allocation9 + $0x13]]  ;;  %s2829_s30 = sld [smem:[#allocation9 + $0xd]] }
  0x45   :  { %175 = vrot.lane.b32.xlu1 %v170_v17, %s2519_s14  ;;  %118 = vrot.lane.b32.xlu0 %v109_v11, %s2519_s14  ;;  %v271_v29 = vrot.slane %v262_v24, 1  ;;  %v210_v31 = vmul.f32 %v208_v20, %v2642_v2  ;;  %v2680_v32 = vmul.f32 %v259_v16, %v2632_v0  ;;  %v135_v34 = vmul.f32 %v2674_v30, %v2642_v2  ;;  %s2520_s12 = smov 126   ;;  %s2904_s13 = sld [smem:[#allocation9 + $0xe]] }
  0x46   :  { %v270_v33 = vsel %vm142_vm0, %v268_v27, %v269_v28  ;;  %v134_v35 = vmul.f32 %v2674_v30, %v2637_v1  ;;  %v2689_v36 = vmul.f32 %v2674_v30, %v2647_v3  ;;  %v359_v37 = vstv %s2163_s16  ;;  %s2910_s0 = sld [smem:[#allocation9 + $0x14]]  ;;  %s2933_s16 = sld [smem:[#allocation9 + $0x11]] }
  0x47   :  { %v144_v38 = vrot.slane %v135_v34, 1  ;;  %v273_v40 = vrot.slane %v2680_v32, 1  ;;  %v2695_v42 = vstv %s2157_s17  ;;  %v272_v43 = vsel %vm142_vm0, %v269_v28, %v271_v29  ;;  %s2947_s17 = sld [smem:[#allocation9]] }
  0x48   :  { %v143_v39 = vrot.slane %v134_v35, 1  ;;  %v146_v41 = vrot.slane %v2689_v36, 1  ;;  %v235_v45 = vmul.f32 %v2695_v42, %v2637_v1  ;;  %v236_v46 = vmul.f32 %v2695_v42, %v2642_v2 }
  0x49   :  { %177 = vrot.lane.b32.xlu1 %v172_v21, %s2519_s14  ;;  %120 = vrot.lane.b32.xlu0 %v110_v18, %s2519_s14  ;;  %v360_v47 = vmul.f32 %v359_v37, %v2637_v1  ;;  %v361_v48 = vmul.f32 %v359_v37, %v2642_v2  ;;  %v2714_v50 = vmul.f32 %v2695_v42, %v2647_v3  ;;  %v308_v56 = vstv %s2666_s15  ;;  %s2912_s15 = sld [smem:[#allocation9 + $0x10]] }
  0x4a   :  { %v2699_v44 = vsel %vm142_vm0, %v143_v39, %v144_v38  ;;  %v2710_v49 = vsel %vm142_vm0, %v144_v38, %v146_v41  ;;  %v243_v51 = vrot.slane %v235_v45, 1  ;;  %v244_v52 = vrot.slane %v236_v46, 1 }
  0x4b   :  { %v211_v53 = vmul.f32 %v208_v20, %v2647_v3  ;;  %v246_v54 = vrot.slane %v2714_v50, 1  ;;  %v274_v55 = vsel %vm142_vm0, %v271_v29, %v273_v40  ;;  %v368_v58 = vrot.slane %v360_v47, 1 }
  0x4c   :  { %v2723_v57 = vsel %vm142_vm0, %v243_v51, %v244_v52  ;;  %v369_v59 = vrot.slane %v361_v48, 1  ;;  %v334_v61 = vstv %s2672_s3  ;;  %v212_v62 = vmul.f32 %v208_v20, %v2632_v0  ;;  %s2949_s3 = sld [smem:[#allocation9 + $0x3]] }
  0x4d   :  { %179 = vrot.lane.b32.xlu1 %v174_v26, %s2519_s14  ;;  %217 = vrot.lane.b32.xlu0 %v209_v25, %s2519_s14  ;;  %v2728_v60 = vsel %vm142_vm0, %v244_v52, %v246_v54  ;;  %v309_v63 = vmul.f32 %v308_v56, %v2637_v1  ;;  %v2735_v4 = vstv %s2160_s18  ;;  %v335_v5 = vmul.f32 %v334_v61, %v2637_v1  ;;  %s2960_s18 = sld [smem:[#allocation9 + $0x16]] }
  0x4e   :  { %v362_v6 = vmul.f32 %v359_v37, %v2647_v3  ;;  %v336_v7 = vmul.f32 %v334_v61, %v2642_v2  ;;  %v337_v8 = vmul.f32 %v334_v61, %v2647_v3  ;;  %v301_v9 = vmul.f32 %v2735_v4, %v2647_v3 }
  0x4f   :  { %v363_v10 = vmul.f32 %v359_v37, %v2632_v0  ;;  %v2744_v11 = vstv %s2159_s19  ;;  %v343_v12 = vrot.slane %v335_v5, 1  ;;  %v2747_v13 = vmul.f32 %v334_v61, %v2632_v0  ;;  %s2990_s19 = sld [smem:[#allocation9 + $0x17]] }
  0x50   :  { %v344_v14 = vrot.slane %v336_v7, 1  ;;  %v346_v15 = vrot.slane %v337_v8, 1  ;;  %v2750_v16 = vadd.f32 %v301_v9, %v2744_v11  ;;  %v310_v17 = vmul.f32 %v308_v56, %v2642_v2 }
  0x51   :  { %275 = vrot.lane.b32.xlu1 %v270_v33, %s2519_s14  ;;  %219 = vrot.lane.b32.xlu0 %v210_v31, %s2519_s14  ;;  %v4169_v18 = vrot.slane %v2747_v13, 1  ;;  %v371_v20 = vrot.slane %v362_v6, 1  ;;  %v373_v23 = vrot.slane %v363_v10, 1  ;;  %v311_v26 = vmul.f32 %v308_v56, %v2647_v3 }
  0x52   :  { %v2758_v21 = vsel %vm142_vm0, %v343_v12, %v344_v14  ;;  %v2761_v22 = vsel %vm142_vm0, %v344_v14, %v346_v15  ;;  %v312_v28 = vmul.f32 %v308_v56, %v2632_v0  ;;  %v302_v29 = vmul.f32 %v2735_v4, %v2632_v0 }
  0x53   :  { %v2766_v24 = vsel %vm142_vm0, %v346_v15, %v4169_v18  ;;  %v372_v25 = vsel %vm142_vm0, %v369_v59, %v371_v20  ;;  %v374_v27 = vsel %vm142_vm0, %v371_v20, %v373_v23  ;;  %v97_v32 = vstv %s96_s20  ;;  %s2992_s20 = sld [smem:[#allocation9 + $0x19]] }
  0x54   :  { %v2783_v31 = vadd.f32 %v302_v29, %v2744_v11  ;;  %v98_v33 = vmul.f32 %v97_v32, %v2637_v1  ;;  %v95_v34 = vstv %s94_s21  ;;  %v99_v37 = vmul.f32 %v97_v32, %v2642_v2  ;;  %s2538_s21 = smov 22  }
  0x55   :  { %277 = vrot.lane.b32.xlu1 %v272_v43, %s2519_s14  ;;  %181 = vrot.lane.b32.xlu0 %v173_v19, %s2519_s14  ;;  %v370_v19 = vsel %vm142_vm0, %v368_v58, %v369_v59  ;;  %v198_v38 = vstv %s2155_s22  ;;  %v2795_v39 = vmul.f32 %v2674_v30, %v2632_v0  ;;  %v100_v43 = vmul.f32 %v97_v32, %v2647_v3  ;;  %s2539_s22 = smov 66  }
  0x56   :  { %v102_v35 = vadd.f32 %v98_v33, %v95_v34  ;;  %v199_v47 = vmul.f32 %v198_v38, %v2637_v1  ;;  %v200_v48 = vmul.f32 %v198_v38, %v2642_v2  ;;  %v103_v51 = vadd.f32 %v99_v37, %v95_v34 }
  0x57   :  { %v196_v52 = vstv %s2154_s23  ;;  %v2813_v56 = vmul.f32 %v2695_v42, %v2632_v0  ;;  %v202_v58 = vmul.f32 %v198_v38, %v2632_v0  ;;  %v2832_v9 = vstv %s2789_s2  ;;  %s3160_s23 = sld [smem:[#allocation9 + $0x6]]  ;;  %s3289_s2 = sld [smem:[#allocation9 + $0x9]] }
  0x58   :  { %v2827_v7 = vadd.f32 %v200_v48, %v196_v52  ;;  %v2835_v10 = vstv %s2791_s1  ;;  %v2853_v20 = vstv %s2801_s27  ;;  %s3313_s1 = sld [smem:[#allocation9 + $0x15]]  ;;  %s3351_s27 = sld [smem:[#allocation9 + $0x12]] }
  0x59   :  { %279 = vrot.lane.b32.xlu1 %v274_v55, %s2519_s14  ;;  %221 = vrot.lane.b32.xlu0 %v211_v53, %s2519_s14  ;;  %v148_v53 = vrot.slane %v2795_v39, 1  ;;  %v201_v55 = vmul.f32 %v198_v38, %v2647_v3  ;;  %v2822_v3 = vstv %s2786_s25  ;;  %4199 = vst [vmem:[#allocation14_spill] sm:$0xff] %v2835_v10  ;;  %v4170_v36 = vrot.slane %v2813_v56, 1  ;;  %s3203_s25 = sld [smem:[#allocation9 + $0xf]] }
  0x5a   :  { %v2840_v14 = vadd.f32 %v202_v58, %v196_v52 }
  0x5b   :  { %v149_v42 = vsel %vm142_vm0, %v146_v41, %v148_v53  ;;  %v2837_v12 = vadd.f32 %v201_v55, %v196_v52  ;;  %v2844_v41 = vmul.f32 %v2735_v4, %v2637_v1  ;;  %v2863_v1 = vstv %s2807_s5  ;;  %s2525_s5 = smov 100  }
  0x5d   :  { %223 = vrot.lane.b32.xlu1 %v212_v62, %s2519_s14  ;;  %317 = vrot.lane.b32.xlu0 %v309_v63, %s2519_s14  ;;  %v104_v62 = vadd.f32 %v100_v43, %v95_v34  ;;  %v2819_v63 = vstv %s2165_s24  ;;  %s3192_s24 = sld [smem:[#allocation9 + $0xc]] }
  0x61   :  { %375 = vrot.lane.b32.xlu1 %v370_v19, %s2519_s14  ;;  %319 = vrot.lane.b32.xlu0 %v310_v17, %s2519_s14  ;;  %v2850_v19 = vstv %s2799_s26  ;;  %s3340_s26 = sld [smem:[#allocation9 + $0x18]] }
  0x65   :  { %377 = vrot.lane.b32.xlu1 %v372_v25, %s2519_s14  ;;  %281 = vrot.lane.b32.xlu0 %v273_v40, %s2519_s14  ;;  %v101_v40 = vmul.f32 %v97_v32, %v2632_v0  ;;  %v203_v0 = vadd.f32 %v199_v47, %v196_v52 }
  0x67   :  { %v105_v59 = vadd.f32 %v101_v40, %v95_v34  ;;  %v2874_v34 = vsel %vm142_vm0, %v246_v54, %v4170_v36 }
  0x69   :  { %321 = vrot.lane.b32.xlu0 %v311_v26, %s2519_s14  ;;  %379 = vrot.lane.b32.xlu1 %v374_v27, %s2519_s14  ;;  %v2857_v27 = vmul.f32 %v2735_v4, %v2642_v2  ;;  %v2877_v2 = vstv %s2816_s29  ;;  %s2526_s29 = smov 16  }
  0x6d   :  { %323 = vrot.lane.b32.xlu0 %v312_v28, %s2519_s14  ;;  %381 = vrot.lane.b32.xlu1 %v373_v23, %s2519_s14  ;;  %v2860_v28 = vstv %s2805_s28  ;;  %s2524_s28 = smov 25  }
  0xb3   :  { %v123_v45 = vpop.permute.xlu1 %122  ;;  %v117_v46 = vpop.permute.xlu0 %116 }
  0xb4   :  { %v128_v30 = vadd.f32 %v117_v46, %v102_v35  ;;  %v131_v23 = vadd.f32 %v123_v45, %v105_v59  ;;  %v2892_v46 = vstv %s2829_s30  ;;  %s2527_s30 = smov 41  }
  0xb5   :  { %4200 = vst [vmem:[#allocation15_spill] sm:$0xff] %v2892_v46 }
  0xb6   :  { %v154_v61 = vadd.f32 %v2699_v44, %v128_v30  ;;  %v157_v43 = vadd.f32 %v148_v53, %v131_v23 }
  0xb7   :  { %v176_v5 = vpop.permute.xlu1 %175  ;;  %v119_v6 = vpop.permute.xlu0 %118 }
  0xb8   :  { %v187_v8 = vadd.f32 %v176_v5, %v154_v61  ;;  %v129_v44 = vadd.f32 %v119_v6, %v103_v51 }
  0xba   :  { %v2846_v15 = vmax.f32 %v187_v8, 0.0  ;;  %v155_v17 = vadd.f32 %v2710_v49, %v129_v44 }
  0xbb   :  { %v178_v25 = vpop.permute.xlu1 %177  ;;  %v121_v26 = vpop.permute.xlu0 %120 }
  0xbc   :  { %v188_v29 = vadd.f32 %v178_v25, %v155_v17  ;;  %v130_v32 = vadd.f32 %v121_v26, %v104_v62  ;;  %v435_v49 = vmul.f32 %v2819_v63, %v2846_v15  ;;  %v409_v33 = vmul.f32 %v2822_v3, %v2846_v15 }
  0xbd   :  { %v486_v4 = vmul.f32 %v2853_v20, %v2846_v15  ;;  %v519_v35 = vmul.f32 %v2850_v19, %v2846_v15  ;;  %v578_v54 = vmul.f32 %v2863_v1, %v2846_v15  ;;  %v611_v38 = vmul.f32 %v2860_v28, %v2846_v15 }
  0xbe   :  { %v2883_v37 = vmax.f32 %v188_v29, 0.0  ;;  %443 = vrot.lane.b32.xlu1 %v435_v49, %s2520_s12  ;;  %417 = vrot.lane.b32.xlu0 %v409_v33, %s2519_s14  ;;  %v156_v50 = vadd.f32 %v149_v42, %v130_v32 }
  0xbf   :  { %v180_v39 = vpop.permute.xlu1 %179  ;;  %v218_v40 = vpop.permute.xlu0 %217  ;;  %v494_v45 = vrot.slane %v486_v4, 1  ;;  %v527_v51 = vrot.slane %v519_v35, 1  ;;  %v586_v62 = vrot.slane %v578_v54, 2  ;;  %v619_v5 = vrot.slane %v611_v38, 2 }
  0xc0   :  { %v189_v47 = vadd.f32 %v180_v39, %v156_v50  ;;  %v229_v48 = vadd.f32 %v218_v40, %v203_v0  ;;  %v410_v30 = vmul.f32 %v2822_v3, %v2883_v37  ;;  %v487_v52 = vmul.f32 %v2853_v20, %v2883_v37 }
  0xc1   :  { %v520_v55 = vmul.f32 %v2850_v19, %v2883_v37  ;;  %v579_v58 = vmul.f32 %v2863_v1, %v2883_v37  ;;  %v612_v53 = vmul.f32 %v2860_v28, %v2883_v37  ;;  %v436_v26 = vmul.f32 %v2819_v63, %v2883_v37 }
  0xc2   :  { %v2906_v59 = vmax.f32 %v189_v47, 0.0  ;;  %419 = vrot.lane.b32.xlu1 %v410_v30, %s2519_s14  ;;  %v254_v61 = vadd.f32 %v2723_v57, %v229_v48  ;;  %v495_v0 = vrot.slane %v487_v52, 1 }
  0xc3   :  { %v276_v6 = vpop.permute.xlu1 %275  ;;  %v220_v42 = vpop.permute.xlu0 %219  ;;  %v528_v8 = vrot.slane %v520_v55, 1  ;;  %v587_v44 = vrot.slane %v579_v58, 2  ;;  %v620_v17 = vrot.slane %v612_v53, 2 }
  0xc4   :  { %v287_v23 = vadd.f32 %v276_v6, %v254_v61  ;;  %v230_v25 = vadd.f32 %v220_v42, %v2827_v7  ;;  %v411_v57 = vmul.f32 %v2822_v3, %v2906_v59  ;;  %v2921_v29 = vmul.f32 %v2853_v20, %v2906_v59 }
  0xc5   :  { %v2924_v32 = vsel %vm142_vm0, %v494_v45, %v495_v0  ;;  %v2928_v49 = vmul.f32 %v2850_v19, %v2906_v59  ;;  %v2931_v33 = vsel %vm142_vm0, %v527_v51, %v528_v8  ;;  %v2942_v35 = vmul.f32 %v2863_v1, %v2906_v59 }
  0xc6   :  { %v2935_v7 = vmax.f32 %v287_v23, 0.0  ;;  %445 = vrot.lane.b32.xlu1 %v436_v26, %s2520_s12  ;;  %421 = vrot.lane.b32.xlu0 %v411_v57, %s2519_s14  ;;  %v255_v4 = vadd.f32 %v2728_v60, %v230_v25  ;;  %v2945_v50 = vsel %vm560_vm1, %v586_v62, %v587_v44  ;;  %v4168_v39 = vrot.slane %v2921_v29, 1 }
  0xc7   :  { %4202 = vst [vmem:[#allocation17_spill] sm:$0xff] %v2942_v35  ;;  %v278_v54 = vpop.permute.xlu1 %277  ;;  %v182_v38 = vpop.permute.xlu0 %181  ;;  %v4167_v40 = vrot.slane %v2928_v49, 1  ;;  %v2955_v60 = vmul.f32 %v2860_v28, %v2906_v59  ;;  %v2958_v45 = vsel %vm560_vm1, %v619_v5, %v620_v17  ;;  %v437_v51 = vmul.f32 %v2819_v63, %v2906_v59 }
  0xc8   :  { %4201 = vst [vmem:[#allocation16_spill] sm:$0xff] %v2935_v7  ;;  %v288_v47 = vadd.f32 %v278_v54, %v255_v4  ;;  %v190_v48 = vadd.f32 %v182_v38, %v157_v43  ;;  %v654_v30 = vmul.f32 %v2832_v9, %v2935_v7  ;;  %v2969_v52 = vsel %vm142_vm0, %v495_v0, %v4168_v39 }
  0xc9   :  { %4203 = vst [vmem:[#allocation18_spill] sm:$0xff] %v2955_v60  ;;  %v2974_v55 = vsel %vm142_vm0, %v528_v8, %v4167_v40  ;;  %v4166_v58 = vrot.slane %v2942_v35, 2  ;;  %v4165_v43 = vrot.slane %v2955_v60, 2  ;;  %v303_v61 = vadd.f32 %v2844_v41, %v2744_v11 }
  0xca   :  { %v2978_v53 = vmax.f32 %v288_v47, 0.0  ;;  %662 = vrot.lane.b32.xlu1 %v654_v30, %s2519_s14  ;;  %447 = vrot.lane.b32.xlu0 %v437_v51, %s2520_s12  ;;  %v2985_v62 = vstv %s2910_s0  ;;  %v2988_v5 = vstv %s2904_s13  ;;  %v2994_v6 = vmax.f32 %v190_v48, 0.0  ;;  %s2529_s13 = smov 125   ;;  %s2530_s0 = smov 122  }
  0xcb   :  { %4205 = vst [vmem:[#allocation20_spill] sm:$0xff] %v2988_v5  ;;  %v280_v42 = vpop.permute.xlu1 %279  ;;  %v222_v0 = vpop.permute.xlu0 %221  ;;  %v2999_v8 = vsel %vm560_vm1, %v587_v44, %v4166_v58  ;;  %v3004_v41 = vsel %vm560_vm1, %v620_v17, %v4165_v43  ;;  %v3007_v23 = vstv %s2912_s15  ;;  %v680_v57 = vmul.f32 %v2835_v10, %v2935_v7  ;;  %s2531_s15 = smov 19  }
  0xcc   :  { %4204 = vst [vmem:[#allocation19_spill] sm:$0xff] %v2978_v53  ;;  %4206 = vst [vmem:[#allocation21_spill] sm:$0xff] %v3007_v23  ;;  %v231_v25 = vadd.f32 %v222_v0, %v2837_v12  ;;  %v655_v26 = vmul.f32 %v2832_v9, %v2978_v53  ;;  %v731_v44 = vmul.f32 %v2892_v46, %v2935_v7  ;;  %v3021_v54 = vstv %s2933_s16  ;;  %s2532_s16 = smov 97  }
  0xcd   :  { %v304_v4 = vadd.f32 %v2857_v27, %v2744_v11  ;;  %v764_v17 = vmul.f32 %v2988_v5, %v2935_v7  ;;  %v3026_v12 = vstv %s4157_s4  ;;  %v732_v47 = vmul.f32 %v2892_v46, %v2978_v53  ;;  %s3092_s4 = sld [smem:[#allocation9 + $0x1a]] }
  0xce   :  { %v256_v38 = vadd.f32 %v2874_v34, %v231_v25  ;;  %664 = vrot.lane.b32.xlu1 %v655_v26, %s2519_s14  ;;  %688 = vrot.lane.b32.xlu0 %v680_v57, %s2520_s12  ;;  %v3034_v11 = vstv %s2947_s17  ;;  %v3037_v27 = vstv %s2949_s3  ;;  %v438_v51 = vmul.f32 %v2819_v63, %v2994_v6  ;;  %s2533_s17 = smov 94   ;;  %s2534_s3 = smov 44  }
  0xcf   :  { %v224_v48 = vpop.permute.xlu1 %223  ;;  %v318_v30 = vpop.permute.xlu0 %317  ;;  %v765_v34 = vmul.f32 %v2988_v5, %v2978_v53  ;;  %v822_v0 = vmul.f32 %v3007_v23, %v2935_v7  ;;  %v3046_v25 = vstv %s2960_s18  ;;  %v412_v43 = vmul.f32 %v2822_v3, %v2994_v6  ;;  %s2535_s18 = smov 47  }
  0xd0   :  { %v289_v26 = vadd.f32 %v280_v42, %v256_v38  ;;  %v329_v57 = vadd.f32 %v318_v30, %v303_v61  ;;  %v739_v58 = vrot.slane %v731_v44, 1  ;;  %v232_v40 = vadd.f32 %v224_v48, %v2840_v14 }
  0xd1   :  { %v740_v39 = vrot.slane %v732_v47, 1  ;;  %v772_v63 = vrot.slane %v764_v17, 1  ;;  %v773_v18 = vrot.slane %v765_v34, 1  ;;  %v3057_v35 = vstv %s2990_s19  ;;  %s2536_s19 = smov 75  }
  0xd2   :  { %v3051_v36 = vmax.f32 %v289_v26, 0.0  ;;  %449 = vrot.lane.b32.xlu1 %v438_v51, %s2520_s12  ;;  %423 = vrot.lane.b32.xlu0 %v412_v43, %s2519_s14  ;;  %v354_v60 = vadd.f32 %v2758_v21, %v329_v57  ;;  %v3060_v61 = vstv %s2992_s20  ;;  %v823_v17 = vmul.f32 %v3007_v23, %v2978_v53  ;;  %s2537_s20 = smov 119  }
  0xd3   :  { %v376_v42 = vpop.permute.xlu1 %375  ;;  %v320_v3 = vpop.permute.xlu0 %319  ;;  %v3063_v44 = vsel %vm142_vm0, %v739_v58, %v740_v39  ;;  %v3066_v14 = vsel %vm142_vm0, %v772_v63, %v773_v18  ;;  %v855_v43 = vmul.f32 %v3021_v54, %v2935_v7  ;;  %v681_v47 = vmul.f32 %v2835_v10, %v2978_v53 }
  0xd4   :  { %4207 = vst [vmem:[#allocation22_spill] sm:$0xff] %v3051_v36  ;;  %v387_v38 = vadd.f32 %v376_v42, %v354_v60  ;;  %v330_v21 = vadd.f32 %v320_v3, %v304_v4  ;;  %v3076_v48 = vmul.f32 %v2850_v19, %v2994_v6  ;;  %v4208_v58 = vrot.slane %v2813_v56, 1 }
  0xd5   :  { %v830_v51 = vrot.slane %v822_v0, 2  ;;  %v831_v34 = vrot.slane %v823_v17, 2  ;;  %v3082_v26 = vmul.f32 %v2892_v46, %v3051_v36  ;;  %v656_v4 = vmul.f32 %v2832_v9, %v3051_v36 }
  0xd6   :  { %v257_v30 = vadd.f32 %v4208_v58, %v232_v40  ;;  %v3084_v57 = vmax.f32 %v387_v38, 0.0  ;;  %690 = vrot.lane.b32.xlu0 %v681_v47, %s2520_s12  ;;  %v355_v60 = vadd.f32 %v2761_v22, %v330_v21  ;;  %v856_v19 = vmul.f32 %v3021_v54, %v2978_v53 }
  0xd7   :  { %4209 = vst [vmem:[#allocation23_spill] sm:$0xff] %v3082_v26  ;;  %v378_v56 = vpop.permute.xlu1 %377  ;;  %v282_v40 = vpop.permute.xlu0 %281  ;;  %v3095_v0 = vsel %vm560_vm1, %v830_v51, %v831_v34  ;;  %v4175_v63 = vrot.slane %v3082_v26, 1  ;;  %v3100_v42 = vmul.f32 %v2988_v5, %v3051_v36  ;;  %v3104_v22 = vmul.f32 %v3007_v23, %v3051_v36 }
  0xd8   :  { %4210 = vst [vmem:[#allocation24_spill] sm:$0xff] %v3084_v57  ;;  %v388_v3 = vadd.f32 %v378_v56, %v355_v60  ;;  %v290_v17 = vadd.f32 %v282_v40, %v257_v30  ;;  %v898_v38 = vmul.f32 %v2877_v2, %v3084_v57  ;;  %v863_v21 = vrot.slane %v855_v43, 2 }
  0xd9   :  { %4211 = vst [vmem:[#allocation25_spill] sm:$0xff] %v3100_v42  ;;  %4212 = vst [vmem:[#allocation26_spill] sm:$0xff] %v3104_v22  ;;  %v3111_v47 = vsel %vm142_vm0, %v740_v39, %v4175_v63  ;;  %v864_v58 = vrot.slane %v856_v19, 2  ;;  %v4176_v51 = vrot.slane %v3100_v42, 1  ;;  %v4177_v5 = vrot.slane %v3104_v22, 2 }
  0xda   :  { %v3115_v46 = vmax.f32 %v388_v3, 0.0  ;;  %906 = vrot.lane.b32.xlu1 %v898_v38, %s2519_s14  ;;  %666 = vrot.lane.b32.xlu0 %v656_v4, %s2519_s14  ;;  %v682_v30 = vmul.f32 %v2835_v10, %v3051_v36  ;;  %v3123_v43 = vmul.f32 %v3021_v54, %v3051_v36  ;;  %v975_v39 = vmul.f32 %v3046_v25, %v3084_v57 }
  0xdb   :  { %v322_v60 = vpop.permute.xlu0 %321  ;;  %v3128_v19 = vsel %vm560_vm1, %v863_v21, %v864_v58  ;;  %v3133_v56 = vsel %vm142_vm0, %v773_v18, %v4176_v51  ;;  %v3138_v4 = vsel %vm560_vm1, %v831_v34, %v4177_v5  ;;  %v1008_v40 = vmul.f32 %v3057_v35, %v3084_v57  ;;  %v380_v18 = vpop.permute.xlu1 %379 }
  0xdc   :  { %v3142_v3 = vmax.f32 %v290_v17, 0.0  ;;  %v331_v38 = vadd.f32 %v322_v60, %v2750_v16  ;;  %v924_v21 = vmul.f32 %v2985_v62, %v3084_v57  ;;  %v866_v63 = vrot.slane %v3123_v43, 2 }
  0xdd   :  { %v3150_v51 = vmul.f32 %v2853_v20, %v2994_v6  ;;  %v3154_v34 = vmul.f32 %v2860_v28, %v2994_v6  ;;  %v976_v17 = vmul.f32 %v3046_v25, %v3115_v46  ;;  %v1009_v16 = vmul.f32 %v3057_v35, %v3115_v46 }
  0xde   :  { %932 = vrot.lane.b32.xlu1 %v924_v21, %s2520_s12  ;;  %692 = vrot.lane.b32.xlu0 %v682_v30, %s2520_s12  ;;  %v356_v43 = vadd.f32 %v2766_v24, %v331_v38  ;;  %v899_v20 = vmul.f32 %v2877_v2, %v3115_v46  ;;  %v3168_v28 = vsel %vm560_vm1, %v864_v58, %v866_v63  ;;  %v3171_v60 = vstv %s3092_s4  ;;  %s2540_s4 = smov 116  }
  0xdf   :  { %v983_v5 = vrot.slane %v975_v39, 1  ;;  %v984_v22 = vrot.slane %v976_v17, 1  ;;  %v324_v10 = vpop.permute.xlu0 %323  ;;  %v1016_v23 = vrot.slane %v1008_v40, 1  ;;  %v1017_v42 = vrot.slane %v1009_v16, 1  ;;  %v382_v38 = vpop.permute.xlu1 %381 }
  0xe0   :  { %v389_v26 = vadd.f32 %v380_v18, %v356_v43  ;;  %v657_v21 = vmul.f32 %v2832_v9, %v3142_v3  ;;  %v332_v30 = vadd.f32 %v324_v10, %v2783_v31  ;;  %v3178_v24 = vmul.f32 %v2985_v62, %v3115_v46 }
  0xe1   :  { %v3182_v58 = vmul.f32 %v2863_v1, %v2994_v6  ;;  %v3185_v39 = vsel %vm142_vm0, %v983_v5, %v984_v22  ;;  %v3188_v40 = vsel %vm142_vm0, %v1016_v23, %v1017_v42  ;;  %v1066_v9 = vmul.f32 %v3060_v61, %v3084_v57 }
  0xe2   :  { %4213 = vst [vmem:[#allocation27_spill] sm:$0xff] %v3178_v24  ;;  %4214 = vst [vmem:[#allocation28_spill] sm:$0xff] %v3188_v40  ;;  %v3194_v31 = vmax.f32 %v389_v26, 0.0  ;;  %908 = vrot.lane.b32.xlu1 %v899_v20, %s2519_s14  ;;  %668 = vrot.lane.b32.xlu0 %v657_v21, %s2519_s14  ;;  %v4183_v10 = vrot.slane %v3076_v48, 1  ;;  %v4215_v1 = vrot.slane %v2747_v13, 1  ;;  %v1067_v23 = vmul.f32 %v3060_v61, %v3115_v46 }
  0xe3   :  { %v1074_v17 = vrot.slane %v1066_v9, 2  ;;  %v3208_v26 = vmul.f32 %v3021_v54, %v3142_v3  ;;  %v1099_v16 = vmul.f32 %v3171_v60, %v3084_v57  ;;  %v1100_v21 = vmul.f32 %v3171_v60, %v3115_v46 }
  0xe4   :  { %v357_v5 = vadd.f32 %v4215_v1, %v332_v30  ;;  %v1075_v20 = vrot.slane %v1067_v23, 2  ;;  %v977_v13 = vmul.f32 %v3046_v25, %v3194_v31  ;;  %v1010_v9 = vmul.f32 %v3057_v35, %v3194_v31 }
  0xe5   :  { %4216 = vst [vmem:[#allocation29_spill] sm:$0xff] %v3208_v26  ;;  %v1107_v1 = vrot.slane %v1099_v16, 2  ;;  %v551_v18 = vstv %s3160_s23  ;;  %v4217_v54 = vrot.slane %v3150_v51, 1  ;;  %v1108_v16 = vrot.slane %v1100_v21, 2  ;;  %s2541_s23 = smov 13  }
  0xe6   :  { %v390_v43 = vadd.f32 %v382_v38, %v357_v5  ;;  %540 = vrot.lane.b32.xlu1 %v4183_v10, %s2520_s12  ;;  %v3229_v5 = vsel %vm560_vm1, %v1074_v17, %v1075_v20  ;;  %v986_v23 = vrot.slane %v977_v13, 1  ;;  %v4185_v30 = vrot.slane %v3154_v34, 2 }
  0xe7   :  { %507 = vrot.lane.b32.xlu0 %v4217_v54, %s2519_s14  ;;  %v4218_v24 = vrot.slane %v3208_v26, 2  ;;  %v1019_v10 = vrot.slane %v1010_v9, 1  ;;  %v3239_v54 = vmul.f32 %v2985_v62, %v3194_v31  ;;  %v3246_v13 = vsel %vm560_vm1, %v1107_v1, %v1108_v16 }
  0xe8   :  { %v3226_v38 = vmax.f32 %v390_v43, 0.0  ;;  %v3243_v17 = vsel %vm142_vm0, %v984_v22, %v986_v23  ;;  %v3250_v21 = vmul.f32 %v2877_v2, %v3194_v31  ;;  %v1101_v9 = vmul.f32 %v3171_v60, %v3194_v31 }
  0xe9   :  { %v3235_v40 = vsel %vm560_vm1, %v866_v63, %v4218_v24  ;;  %4219 = vst [vmem:[#allocation30_spill] sm:$0xff] %v3239_v54  ;;  %v3253_v63 = vsel %vm142_vm0, %v1017_v42, %v1019_v10  ;;  %v1068_v24 = vmul.f32 %v3060_v61, %v3194_v31  ;;  %v3260_v43 = vstv %s3192_s24  ;;  %s2542_s24 = smov 69  }
  0xea   :  { %4220 = vst [vmem:[#allocation31_spill] sm:$0xff] %v3250_v21  ;;  %4221 = vst [vmem:[#allocation32_spill] sm:$0xff] %v3253_v63  ;;  %632 = vrot.lane.b32.xlu1 %v4185_v30, %s2520_s12  ;;  %v4222_v22 = vrot.slane %v3182_v58, 2  ;;  %v3270_v42 = vmul.f32 %v3057_v35, %v3226_v38  ;;  %v3274_v1 = vmul.f32 %v3046_v25, %v3226_v38  ;;  %v3281_v21 = vstv %s3203_s25  ;;  %s2543_s25 = smov 63  }
  0xeb   :  { %v3278_v26 = vmul.f32 %v2985_v62, %v3226_v38  ;;  %v1077_v54 = vrot.slane %v1068_v24, 2  ;;  %v1110_v30 = vrot.slane %v1101_v9, 2  ;;  %v3285_v63 = vmul.f32 %v2877_v2, %v3226_v38 }
  0xec   :  { %599 = vrot.lane.b32.xlu0 %v4222_v22, %s2519_s14  ;;  %4223 = vst [vmem:[#allocation33_spill] sm:$0xff] %v3270_v42  ;;  %4224 = vst [vmem:[#allocation34_spill] sm:$0xff] %v3274_v1  ;;  %v461_v35 = vmul.f32 %v3037_v27, %v2846_v15  ;;  %v4186_v25 = vrot.slane %v3270_v42, 1  ;;  %v402_v62 = vmul.f32 %v3034_v11, %v2994_v6 }
  0xed   :  { %4225 = vst [vmem:[#allocation35_spill] sm:$0xff] %v3278_v26  ;;  %4226 = vst [vmem:[#allocation36_spill] sm:$0xff] %v3285_v63  ;;  %v3297_v24 = vmul.f32 %v3171_v60, %v3226_v38  ;;  %v3300_v9 = vsel %vm560_vm1, %v1075_v20, %v1077_v54  ;;  %v3303_v2 = vsel %vm560_vm1, %v1108_v16, %v1110_v30 }
  0xee   :  { %4228 = vst [vmem:[#allocation38_spill] sm:$0xff] %v3303_v2  ;;  %v3307_v63 = vmul.f32 %v3060_v61, %v3226_v38  ;;  %v3311_v22 = vmul.f32 %v3037_v27, %v2994_v6  ;;  %503 = vrot.lane.b32.xlu1 %v2969_v52, %s2519_s14  ;;  %v3322_v60 = vsel %vm142_vm0, %v1019_v10, %v4186_v25  ;;  %v4230_v61 = vrot.slane %v3274_v1, 1 }
  0xef   :  { %4227 = vst [vmem:[#allocation37_spill] sm:$0xff] %v3297_v24  ;;  %v3330_v16 = vadd.f32 %v402_v62, %v3026_v12  ;;  %v4188_v26 = vrot.slane %v3297_v24, 2  ;;  %v462_v10 = vmul.f32 %v3037_v27, %v2883_v37  ;;  %v463_v62 = vmul.f32 %v3037_v27, %v2906_v59 }
  0xf0   :  { %4229 = vst [vmem:[#allocation39_spill] sm:$0xff] %v3307_v63  ;;  %501 = vrot.lane.b32.xlu0 %v2924_v32, %s2519_s14  ;;  %v3327_v20 = vsel %vm142_vm0, %v986_v23, %v4230_v61  ;;  %v4192_v52 = vrot.slane %v3307_v63, 2  ;;  %v3336_v32 = vmul.f32 %v551_v18, %v2994_v6  ;;  %v553_v61 = vmul.f32 %v551_v18, %v2883_v37 }
  0xf1   :  { %v3345_v23 = vsel %vm560_vm1, %v1110_v30, %v4188_v26  ;;  %v554_v25 = vmul.f32 %v551_v18, %v2906_v59  ;;  %v470_v2 = vrot.slane %v462_v10, 1  ;;  %v469_v24 = vrot.slane %v461_v35, 1 }
  0xf2   :  { %v3356_v6 = vsel %vm560_vm1, %v1077_v54, %v4192_v52  ;;  %v552_v30 = vmul.f32 %v551_v18, %v2846_v15  ;;  %536 = vrot.lane.b32.xlu1 %v2974_v55, %s2520_s12  ;;  %v4195_v27 = vrot.slane %v3336_v32, 2  ;;  %v472_v26 = vrot.slane %v463_v62, 1 }
  0xf3   :  { %v562_v1 = vrot.slane %v553_v61, 2  ;;  %v564_v42 = vrot.slane %v554_v25, 2  ;;  %v3365_v63 = vsel %vm142_vm0, %v469_v24, %v470_v2  ;;  %v3368_v10 = vstv %s3289_s2  ;;  %s2544_s2 = smov 91  }
  0xf4   :  { %534 = vrot.lane.b32.xlu0 %v2931_v33, %s2520_s12  ;;  %v561_v54 = vrot.slane %v552_v30, 2  ;;  %v706_v18 = vmul.f32 %v3260_v43, %v2935_v7  ;;  %v3373_v55 = vsel %vm142_vm0, %v470_v2, %v472_v26  ;;  %v707_v35 = vmul.f32 %v3260_v43, %v2978_v53 }
  0xf5   :  { %v3376_v33 = vsel %vm560_vm1, %v562_v1, %v564_v42  ;;  %v4231_v25 = vrot.slane %v3311_v22, 1  ;;  %v797_v2 = vmul.f32 %v3281_v21, %v2935_v7  ;;  %v798_v61 = vmul.f32 %v3281_v21, %v2978_v53 }
  0xf6   :  { %v3386_v62 = vsel %vm560_vm1, %v561_v54, %v562_v1  ;;  %v949_v30 = vstv %s3313_s1  ;;  %595 = vrot.lane.b32.xlu1 %v2999_v8, %s2519_s14  ;;  %v714_v52 = vrot.slane %v706_v18, 1  ;;  %v3400_v1 = vsel %vm560_vm1, %v564_v42, %v4195_v27  ;;  %s2545_s1 = smov 38  }
  0xf7   :  { %v3383_v24 = vsel %vm142_vm0, %v472_v26, %v4231_v25  ;;  %4232 = vst [vmem:[#allocation40_spill] sm:$0xff] %v3386_v62  ;;  %v715_v26 = vrot.slane %v707_v35, 1  ;;  %4233 = vst [vmem:[#allocation41_spill] sm:$0xff] %v3400_v1  ;;  %v708_v54 = vmul.f32 %v3260_v43, %v3051_v36  ;;  %v805_v25 = vrot.slane %v797_v2, 2 }
  0xf8   :  { %593 = vrot.lane.b32.xlu0 %v2945_v50, %s2519_s14  ;;  %v806_v7 = vrot.slane %v798_v61, 2  ;;  %v799_v53 = vmul.f32 %v3281_v21, %v3051_v36  ;;  %v1040_v62 = vstv %s3340_s26  ;;  %v3411_v18 = vstv %s3351_s27  ;;  %s2546_s26 = smov 88  }
  0xf9   :  { %v3408_v8 = vsel %vm142_vm0, %v714_v52, %v715_v26  ;;  %v717_v50 = vrot.slane %v708_v54, 1  ;;  %v950_v35 = vmul.f32 %v949_v30, %v3084_v57  ;;  %v951_v1 = vmul.f32 %v949_v30, %v3115_v46 }
  0xfa   :  { %v3415_v42 = vsel %vm560_vm1, %v805_v25, %v806_v7  ;;  %v808_v27 = vrot.slane %v799_v53, 2  ;;  %v3420_v2 = vmul.f32 %v3260_v43, %v3142_v3  ;;  %628 = vrot.lane.b32.xlu1 %v3004_v41, %s2520_s12  ;;  %v3431_v54 = vmul.f32 %v3368_v10, %v3142_v3 }
  0xfb   :  { %4234 = vst [vmem:[#allocation42_spill] sm:$0xff] %v3415_v42  ;;  %v3427_v52 = vsel %vm142_vm0, %v715_v26, %v717_v50  ;;  %v958_v61 = vrot.slane %v950_v35, 1  ;;  %v1041_v53 = vmul.f32 %v1040_v62, %v3084_v57  ;;  %v959_v43 = vrot.slane %v951_v1, 1 }
  0xfc   :  { %626 = vrot.lane.b32.xlu0 %v2958_v45, %s2520_s12  ;;  %4235 = vst [vmem:[#allocation43_spill] sm:$0xff] %v3427_v52  ;;  %v3435_v25 = vsel %vm560_vm1, %v806_v7, %v808_v27  ;;  %v4198_v36 = vrot.slane %v3420_v2, 1  ;;  %v1042_v41 = vmul.f32 %v1040_v62, %v3115_v46  ;;  %v4236_v45 = vrot.slane %v3150_v51, 1 }
  0xfd   :  { %v4237_v26 = vrot.slane %v2921_v29, 1  ;;  %v1049_v42 = vrot.slane %v1041_v53, 2  ;;  %v3446_v52 = vmul.f32 %v3281_v21, %v3142_v3  ;;  %v952_v57 = vmul.f32 %v949_v30, %v3194_v31 }
  0xfe   :  { %v3450_v7 = vsel %vm142_vm0, %v958_v61, %v959_v43  ;;  %v3455_v1 = vsel %vm142_vm0, %v717_v50, %v4198_v36  ;;  %v1050_v51 = vrot.slane %v1042_v41, 2  ;;  %v1043_v29 = vmul.f32 %v1040_v62, %v3194_v31  ;;  %746 = vrot.lane.b32.xlu1 %v3063_v44, %s2519_s14 }
  0xff   :  { %v500_v35 = vsel %vm142_vm0, %v4237_v26, %v4236_v45  ;;  %v810_v21 = vrot.slane %v3446_v52, 2  ;;  %v961_v53 = vrot.slane %v952_v57, 1  ;;  %v3463_v45 = vmul.f32 %v949_v30, %v3226_v38 }
 0x100   :  { %505 = vrot.lane.b32.xlu0 %v500_v35, %s2519_s14  ;;  %v3467_v61 = vmul.f32 %v3411_v18, %v3226_v38  ;;  %v3470_v50 = vsel %vm560_vm1, %v1049_v42, %v1050_v51  ;;  %v1052_v41 = vrot.slane %v1043_v29, 2  ;;  %v3473_v26 = vmul.f32 %v1040_v62, %v3226_v38 }
 0x101   :  { %v3478_v44 = vsel %vm560_vm1, %v808_v27, %v810_v21  ;;  %v3481_v57 = vsel %vm142_vm0, %v959_v43, %v961_v53  ;;  %v963_v30 = vrot.slane %v3463_v45, 1  ;;  %v4238_v35 = vrot.slane %v3076_v48, 1  ;;  %v4241_v48 = vld [vmem:[#allocation17_spill] sm:$0xff] }
 0x102   :  { %v4239_v36 = vrot.slane %v2928_v49, 1  ;;  %v3490_v29 = vsel %vm560_vm1, %v1050_v51, %v1052_v41  ;;  %v1054_v38 = vrot.slane %v3473_v26, 2  ;;  %779 = vrot.lane.b32.xlu1 %v3066_v14, %s2520_s12  ;;  %v4242_v62 = vrot.slane %v4241_v48, 2  ;;  %v4244_v51 = vld [vmem:[#allocation18_spill] sm:$0xff] }
 0x103   :  { %v3499_v27 = vsel %vm142_vm0, %v961_v53, %v963_v30  ;;  %v4243_v14 = vrot.slane %v3154_v34, 2  ;;  %v4245_v53 = vrot.slane %v4244_v51, 2  ;;  %v4247_v34 = vld [vmem:[#allocation20_spill] sm:$0xff] }
 0x104   :  { %v533_v42 = vsel %vm142_vm0, %v4239_v36, %v4238_v35  ;;  %v3504_v49 = vsel %vm560_vm1, %v1052_v41, %v1054_v38  ;;  %v4240_v36 = vrot.slane %v3182_v58, 2  ;;  %v4246_v58 = vld [vmem:[#allocation15_spill] sm:$0xff]  ;;  %v4253_v51 = vld [vmem:[#allocation28_spill] sm:$0xff] }
 0x105   :  { %538 = vrot.lane.b32.xlu0 %v533_v42, %s2520_s12  ;;  %v625_v35 = vsel %vm560_vm1, %v4245_v53, %v4243_v14  ;;  %v734_v41 = vmul.f32 %v4246_v58, %v3142_v3  ;;  %v767_v42 = vmul.f32 %v4247_v34, %v3142_v3  ;;  %v4252_v14 = vld [vmem:[#allocation21_spill] sm:$0xff]  ;;  %v4256_v58 = vld [vmem:[#allocation26_spill] sm:$0xff] }
 0x106   :  { %v592_v43 = vsel %vm560_vm1, %v4242_v62, %v4240_v36  ;;  %837 = vrot.lane.b32.xlu1 %v3095_v0, %s2519_s14 }
 0x107   :  { %v744_v0 = vrot.slane %v734_v41, 1  ;;  %v777_v62 = vrot.slane %v767_v42, 1  ;;  %v4257_v41 = vrot.slane %v4256_v58, 2 }
 0x109   :  { %597 = vrot.lane.b32.xlu0 %v592_v43, %s2519_s14 }
 0x10a   :  { %748 = vrot.lane.b32.xlu1 %v3111_v47, %s2519_s14  ;;  %v4248_v47 = vld [vmem:[#allocation23_spill] sm:$0xff] }
 0x10b   :  { %v4249_v36 = vrot.slane %v4248_v47, 1 }
 0x10d   :  { %630 = vrot.lane.b32.xlu0 %v625_v35, %s2520_s12  ;;  %v745_v48 = vsel %vm142_vm0, %v4249_v36, %v744_v0 }
 0x10e   :  { %870 = vrot.lane.b32.xlu1 %v3128_v19, %s2520_s12  ;;  %v4250_v19 = vld [vmem:[#allocation25_spill] sm:$0xff] }
 0x111   :  { %781 = vrot.lane.b32.xlu0 %v3133_v56, %s2520_s12  ;;  %v4251_v56 = vrot.slane %v4250_v19, 1 }
 0x112   :  { %839 = vrot.lane.b32.xlu1 %v3138_v4, %s2519_s14  ;;  %v825_v4 = vmul.f32 %v4252_v14, %v3142_v3 }
 0x113   :  { %v778_v43 = vsel %vm142_vm0, %v4251_v56, %v777_v62 }
 0x114   :  { %v835_v35 = vrot.slane %v825_v4, 2 }
 0x115   :  { %872 = vrot.lane.b32.xlu0 %v3168_v28, %s2520_s12  ;;  %v4254_v28 = vld [vmem:[#allocation14_spill] sm:$0xff] }
 0x116   :  { %990 = vrot.lane.b32.xlu1 %v3185_v39, %s2519_s14  ;;  %v683_v53 = vmul.f32 %v4254_v28, %v3142_v3  ;;  %v4255_v39 = vld [vmem:[#allocation27_spill] sm:$0xff]  ;;  %v836_v34 = vsel %vm560_vm1, %v4257_v41, %v835_v35  ;;  %v399_v3 = vmul.f32 %v3034_v11, %v2846_v15  ;;  %vm1217_vm1 = vcmask 1022976  }
 0x118   :  { %v403_v42 = vadd.f32 %v399_v3, %v3026_v12 }
 0x119   :  { %750 = vrot.lane.b32.xlu0 %v745_v48, %s2519_s14 }
 0x11a   :  { %1023 = vrot.lane.b32.xlu1 %v4253_v51, %s2520_s12 }
 0x11d   :  { %783 = vrot.lane.b32.xlu0 %v778_v43, %s2520_s12 }
 0x11e   :  { %694 = vrot.lane.b32.xlu1 %v683_v53, %s2520_s12  ;;  %v4261_v53 = vld [vmem:[#allocation29_spill] sm:$0xff] }
 0x121   :  { %934 = vrot.lane.b32.xlu0 %v4255_v39, %s2520_s12  ;;  %v4262_v39 = vrot.slane %v4261_v53, 2 }
 0x122   :  { %1081 = vrot.lane.b32.xlu1 %v3229_v5, %s2519_s14  ;;  %v4258_v5 = vld [vmem:[#allocation32_spill] sm:$0xff] }
 0x125   :  { %841 = vrot.lane.b32.xlu0 %v836_v34, %s2519_s14  ;;  %v4264_v34 = vld [vmem:[#allocation35_spill] sm:$0xff] }
 0x126   :  { %992 = vrot.lane.b32.xlu1 %v3243_v17, %s2519_s14  ;;  %v400_v17 = vmul.f32 %v3034_v11, %v2883_v37 }
 0x128   :  { %v404_v48 = vadd.f32 %v400_v17, %v3026_v12 }
 0x129   :  { %874 = vrot.lane.b32.xlu0 %v3235_v40, %s2520_s12 }
 0x12a   :  { %1114 = vrot.lane.b32.xlu1 %v3246_v13, %s2520_s12  ;;  %v4259_v13 = vld [vmem:[#allocation30_spill] sm:$0xff] }
 0x12d   :  { %752 = vrot.lane.b32.xlu0 %v744_v0, %s2519_s14  ;;  %v4260_v0 = vld [vmem:[#allocation31_spill] sm:$0xff] }
 0x12e   :  { %785 = vrot.lane.b32.xlu1 %v777_v62, %s2520_s12  ;;  %v401_v62 = vmul.f32 %v3034_v11, %v2906_v59  ;;  %v4263_v59 = vld [vmem:[#allocation38_spill] sm:$0xff] }
 0x130   :  { %v444_v47 = vpop.permute.xlu1 %443  ;;  %v418_v40 = vpop.permute.xlu0 %417  ;;  %v405_v37 = vadd.f32 %v401_v62, %v3026_v12 }
 0x131   :  { %1025 = vrot.lane.b32.xlu0 %v4258_v5, %s2520_s12  ;;  %v429_v36 = vadd.f32 %v418_v40, %v403_v42 }
 0x132   :  { %936 = vrot.lane.b32.xlu1 %v4259_v13, %s2520_s12 }
 0x133   :  { %v455_v15 = vadd.f32 %v444_v47, %v429_v36  ;;  %v4267_v47 = vld [vmem:[#allocation33_spill] sm:$0xff]  ;;  %v4269_v36 = vld [vmem:[#allocation34_spill] sm:$0xff] }
 0x134   :  { %v420_v19 = vpop.permute.xlu1 %419  ;;  %v4268_v40 = vrot.slane %v4267_v47, 1  ;;  %v4270_v13 = vrot.slane %v4269_v36, 1 }
 0x135   :  { %910 = vrot.lane.b32.xlu0 %v4260_v0, %s2519_s14  ;;  %v430_v56 = vadd.f32 %v420_v19, %v404_v48  ;;  %v480_v43 = vadd.f32 %v3365_v63, %v455_v15  ;;  %v4273_v15 = vld [vmem:[#allocation39_spill] sm:$0xff]  ;;  %v1130_v19 = vlaneseq }
 0x136   :  { %843 = vrot.lane.b32.xlu1 %v835_v35, %s2519_s14 }
 0x137   :  { %vm1132_vm2 = vcmp.lt.s32.totalorder %v1130_v19, 640  ;;  %vm1135_vm3 = vcmp.lt.s32.totalorder %v1130_v19, 25  ;;  %vm1164_vm4 = vcmp.ge.s32.totalorder %v1130_v19, 25  ;;  %vm1165_vm5 = vcmp.lt.s32.totalorder %v1130_v19, 50 }
 0x138   :  { %v446_v14 = vpop.permute.xlu1 %445  ;;  %v422_v4 = vpop.permute.xlu0 %421  ;;  %vm1166_vm6 = vmand %vm1164_vm4, %vm1165_vm5  ;;  %vm1172_vm7 = vcmp.ge.s32.totalorder %v1130_v19, 50  ;;  %vm1173_vm8 = vcmp.lt.s32.totalorder %v1130_v19, 75  ;;  %vm3758_vm10 = vcmp.ge.s32.totalorder %v1130_v19, 75  ;;  %vm3763_vm11 = vcmp.lt.s32.totalorder %v1130_v19, 100 }
 0x139   :  { %1083 = vrot.lane.b32.xlu0 %v3300_v9, %s2519_s14  ;;  %v456_v51 = vadd.f32 %v446_v14, %v430_v56  ;;  %v431_v28 = vadd.f32 %v422_v4, %v405_v37  ;;  %v2521_v56 = vmov 0.0   ;;  %vm1174_vm9 = vmand %vm1172_vm7, %vm1173_vm8  ;;  %vm3768_vm12 = vcmp.ge.s32.totalorder %v1130_v19, 100 }
 0x13a   :  { %876 = vrot.lane.b32.xlu1 %v4262_v39, %s2520_s12  ;;  %1134 = vst.msk [vmem:[#allocation2] sm:$0x1f] %vm1132_vm2, %v2521_v56  ;;  %vm3773_vm13 = vcmp.lt.s32.totalorder %v1130_v19, 125  ;;  %vm3778_vm14 = vcmp.ge.s32.totalorder %v1130_v19, 125  ;;  %vm3783_vm15 = vcmp.lt.s32.totalorder %v1130_v19, 150  ;;  %vm1182_vm0 = vmand %vm3758_vm10, %vm3763_vm11  ;;  %vm3801_vm4 = vcmp.lt.s32.totalorder %v1130_v19, 47 }
 0x13b   :  { %v481_v11 = vadd.f32 %v3373_v55, %v456_v51  ;;  %v4265_v55 = vld [vmem:[#allocation36_spill] sm:$0xff]  ;;  %vm1204_vm2 = vmand %vm3768_vm12, %vm3773_vm13  ;;  %vm3815_vm7 = vcmp.lt.s32.totalorder %v1130_v19, 72  ;;  %vm3820_vm8 = vcmp.ge.s32.totalorder %v1130_v19, 72  ;;  %vm3834_vm11 = vcmp.ge.s32.totalorder %v1130_v19, 97 }
 0x13c   :  { %v3592_v63 = vpop.permute.xlu1 %662  ;;  %v448_v35 = vpop.permute.xlu0 %447  ;;  %vm1222_vm5 = vmand %vm3778_vm14, %vm3783_vm15  ;;  %vm3839_vm12 = vcmp.lt.s32.totalorder %v1130_v19, 122  ;;  %vm3848_vm14 = vcmp.ge.s32.totalorder %v1130_v19, 122  ;;  %vm3853_vm15 = vcmp.lt.s32.totalorder %v1130_v19, 147 }
 0x13d   :  { %1116 = vrot.lane.b32.xlu0 %v4263_v59, %s2520_s12  ;;  %v457_v58 = vadd.f32 %v448_v35, %v431_v28  ;;  %v4275_v35 = vrot.slane %v3336_v32, 2 }
 0x13e   :  { %1027 = vrot.lane.b32.xlu1 %v3322_v60, %s2520_s12 }
 0x13f   :  { %v3599_v12 = vadd.f32 %v3383_v24, %v457_v58  ;;  %v4266_v24 = vrot.slane %v3311_v22, 1  ;;  %v4274_v22 = vrot.slane %v4273_v15, 2 }
 0x140   :  { %v665_v9 = vpop.permute.xlu1 %664  ;;  %v689_v41 = vpop.permute.xlu0 %688 }
 0x141   :  { %994 = vrot.lane.b32.xlu0 %v3327_v20, %s2519_s14 }
 0x142   :  { %938 = vrot.lane.b32.xlu1 %v4264_v34, %s2520_s12 }
 0x144   :  { %v424_v3 = vpop.permute.xlu0 %423  ;;  %v450_v42 = vpop.permute.xlu1 %449 }
 0x145   :  { %912 = vrot.lane.b32.xlu0 %v4265_v55, %s2519_s14  ;;  %v432_v5 = vadd.f32 %v424_v3, %v3330_v16 }
 0x146   :  { %1118 = vrot.lane.b32.xlu1 %v3345_v23, %s2520_s12  ;;  %v4271_v23 = vld [vmem:[#allocation37_spill] sm:$0xff] }
 0x147   :  { %v458_v60 = vadd.f32 %v450_v42, %v432_v5 }
 0x148   :  { %v691_v20 = vpop.permute.xlu0 %690 }
 0x149   :  { %1085 = vrot.lane.b32.xlu0 %v3356_v6, %s2519_s14  ;;  %v483_v17 = vadd.f32 %v4266_v24, %v458_v60  ;;  %v4272_v6 = vrot.slane %v4271_v23, 2 }
 0x14a   :  { %1029 = vrot.lane.b32.xlu1 %v4268_v40, %s2520_s12 }
 0x14c   :  { %v3618_v16 = vpop.permute.xlu1 %906  ;;  %v3620_v0 = vpop.permute.xlu0 %666 }
 0x14d   :  { %996 = vrot.lane.b32.xlu0 %v4270_v13, %s2519_s14 }
 0x14e   :  { %1120 = vrot.lane.b32.xlu1 %v4272_v6, %s2520_s12  ;;  %v4276_v6 = vld [vmem:[#allocation40_spill] sm:$0xff]  ;;  %s2528_s12 = smov 50  }
 0x150   :  { %v3628_v48 = vpop.permute.xlu1 %932  ;;  %v3630_v62 = vpop.permute.xlu0 %692 }
 0x151   :  { %1087 = vrot.lane.b32.xlu0 %v4274_v22, %s2519_s14  ;;  %s2523_s14 = smov 72  }
 0x154   :  { %v3634_v37 = vpop.permute.xlu1 %908  ;;  %v669_v14 = vpop.permute.xlu0 %668 }
 0x158   :  { %v541_v4 = vpop.permute.xlu1 %540 }
 0x159   :  { %v508_v51 = vpop.permute.xlu0 %507 }
 0x15a   :  { %v516_v28 = vadd.f32 %v508_v51, %v483_v17 }
 0x15c   :  { %v549_v53 = vadd.f32 %v541_v4, %v516_v28  ;;  %v633_v39 = vpop.permute.xlu1 %632 }
 0x15e   :  { %v600_v59 = vpop.permute.xlu0 %599  ;;  %v575_v58 = vadd.f32 %v4275_v35, %v549_v53 }
 0x160   :  { %v608_v34 = vadd.f32 %v600_v59, %v575_v58  ;;  %v504_v55 = vpop.permute.xlu1 %503 }
 0x161   :  { %v514_v42 = vadd.f32 %v504_v55, %v481_v11  ;;  %v4277_v11 = vld [vmem:[#allocation19_spill] sm:$0xff] }
 0x162   :  { %v502_v3 = vpop.permute.xlu0 %501  ;;  %v641_v5 = vadd.f32 %v633_v39, %v608_v34  ;;  %v4278_v39 = vld [vmem:[#allocation16_spill] sm:$0xff] }
 0x163   :  { %v513_v60 = vadd.f32 %v502_v3, %v480_v43  ;;  %v645_v43 = vmul.f32 %v3368_v10, %v4277_v11  ;;  %v644_v59 = vmul.f32 %v3368_v10, %v4278_v39 }
 0x164   :  { %v651_v24 = vadd.f32 %v3431_v54, %v641_v5  ;;  %v537_v47 = vpop.permute.xlu1 %536 }
 0x165   :  { %v547_v36 = vadd.f32 %v537_v47, %v514_v42 }
 0x166   :  { %v535_v40 = vpop.permute.xlu0 %534  ;;  %v3639_v23 = vadd.f32 %v669_v14, %v651_v24 }
 0x167   :  { %v546_v13 = vadd.f32 %v535_v40, %v513_v60  ;;  %v573_v17 = vadd.f32 %v3376_v33, %v547_v36 }
 0x168   :  { %v596_v32 = vpop.permute.xlu1 %595 }
 0x169   :  { %v572_v15 = vadd.f32 %v4276_v6, %v546_v13  ;;  %v606_v4 = vadd.f32 %v596_v32, %v573_v17  ;;  %v4279_v13 = vld [vmem:[#allocation43_spill] sm:$0xff] }
 0x16a   :  { %v594_v22 = vpop.permute.xlu0 %593 }
 0x16b   :  { %v605_v51 = vadd.f32 %v594_v22, %v572_v15  ;;  %v4280_v15 = vld [vmem:[#allocation41_spill] sm:$0xff] }
 0x16c   :  { %v629_v28 = vpop.permute.xlu1 %628 }
 0x16d   :  { %v639_v54 = vadd.f32 %v629_v28, %v606_v4 }
 0x16e   :  { %v627_v53 = vpop.permute.xlu0 %626 }
 0x16f   :  { %v638_v35 = vadd.f32 %v627_v53, %v605_v51  ;;  %v649_v14 = vadd.f32 %v645_v43, %v639_v54 }
 0x170   :  { %v747_v34 = vpop.permute.xlu1 %746 }
 0x171   :  { %v648_v58 = vadd.f32 %v644_v59, %v638_v35  ;;  %v675_v55 = vadd.f32 %v665_v9, %v649_v14  ;;  %v4281_v9 = vld [vmem:[#allocation42_spill] sm:$0xff]  ;;  %v4283_v14 = vld [vmem:[#allocation24_spill] sm:$0xff] }
 0x172   :  { %v506_v33 = vpop.permute.xlu0 %505 }
 0x173   :  { %v674_v3 = vadd.f32 %v3592_v63, %v648_v58  ;;  %v515_v42 = vadd.f32 %v506_v33, %v3599_v12  ;;  %v701_v60 = vadd.f32 %v691_v20, %v675_v55  ;;  %v4282_v12 = vld [vmem:[#allocation22_spill] sm:$0xff]  ;;  %v888_v58 = vmul.f32 %v3411_v18, %v4283_v14 }
 0x174   :  { %v780_v24 = vpop.permute.xlu1 %779  ;;  %v646_v20 = vmul.f32 %v3368_v10, %v4282_v12 }
 0x175   :  { %v700_v5 = vadd.f32 %v689_v41, %v674_v3  ;;  %v726_v17 = vadd.f32 %v4279_v13, %v701_v60 }
 0x177   :  { %v539_v47 = vpop.permute.xlu0 %538  ;;  %v725_v40 = vadd.f32 %v3408_v8, %v700_v5 }
 0x178   :  { %v548_v36 = vadd.f32 %v539_v47, %v515_v42  ;;  %v838_v22 = vpop.permute.xlu1 %837 }
 0x179   :  { %v758_v6 = vadd.f32 %v747_v34, %v725_v40 }
 0x17a   :  { %v574_v32 = vadd.f32 %v4280_v15, %v548_v36 }
 0x17b   :  { %v598_v4 = vpop.permute.xlu0 %597  ;;  %v791_v51 = vadd.f32 %v780_v24, %v758_v6 }
 0x17c   :  { %v607_v63 = vadd.f32 %v598_v4, %v574_v32  ;;  %v749_v41 = vpop.permute.xlu1 %748 }
 0x17d   :  { %v816_v28 = vadd.f32 %v4281_v9, %v791_v51  ;;  %v759_v8 = vadd.f32 %v749_v41, %v726_v17 }
 0x17f   :  { %v631_v53 = vpop.permute.xlu0 %630  ;;  %v849_v43 = vadd.f32 %v838_v22, %v816_v28 }
 0x180   :  { %v640_v11 = vadd.f32 %v631_v53, %v607_v63  ;;  %v871_v39 = vpop.permute.xlu1 %870 }
 0x181   :  { %v882_v34 = vadd.f32 %v871_v39, %v849_v43 }
 0x182   :  { %v650_v54 = vadd.f32 %v646_v20, %v640_v11 }
 0x183   :  { %v782_v59 = vpop.permute.xlu0 %781  ;;  %v892_v55 = vadd.f32 %v888_v58, %v882_v34  ;;  %v2522_v58 = vmov 1966171168  }
 0x184   :  { %v676_v35 = vadd.f32 %v3620_v0, %v650_v54  ;;  %v792_v33 = vadd.f32 %v782_v59, %v759_v8  ;;  %v840_v42 = vpop.permute.xlu1 %839  ;;  %v889_v0 = vmul.f32 %v3411_v18, %v3115_v46  ;;  %v1140_v34 = vunpack.c.l.s4 %v2522_v58 }
 0x185   :  { %v918_v60 = vadd.f32 %v3618_v16, %v892_v55 }
 0x186   :  { %v817_v3 = vadd.f32 %v3435_v25, %v792_v33  ;;  %v702_v5 = vadd.f32 %v3630_v62, %v676_v35 }
 0x187   :  { %v873_v10 = vpop.permute.xlu0 %872  ;;  %v944_v36 = vadd.f32 %v3628_v48, %v918_v60 }
 0x188   :  { %v850_v24 = vadd.f32 %v840_v42, %v817_v3  ;;  %v727_v47 = vadd.f32 %v3455_v1, %v702_v5  ;;  %v991_v13 = vpop.permute.xlu1 %990  ;;  %v1141_v42 = vunpack.c.0.s8 %v1140_v34 }
 0x189   :  { %v969_v25 = vadd.f32 %v3450_v7, %v944_v36  ;;  %v4284_v7 = vrot.slane %v3420_v2, 1 }
 0x18a   :  { %v883_v40 = vadd.f32 %v873_v10, %v850_v24  ;;  %v3680_v10 = vshrl.u32 %v1130_v19, 7 }
 0x18b   :  { %v751_v17 = vpop.permute.xlu0 %750  ;;  %v1002_v15 = vadd.f32 %v991_v13, %v969_v25 }
 0x18c   :  { %v893_v6 = vadd.f32 %v889_v0, %v883_v40  ;;  %v760_v62 = vadd.f32 %v751_v17, %v727_v47  ;;  %v1024_v22 = vpop.permute.xlu1 %1023  ;;  %v3683_v40 = vsub.s32 %v1141_v42, %v3680_v10  ;;  %v2400_v42 = vld [vmem:[#allocation10 + $0x80] sm:$0xff]  }
 0x18d   :  { %v1035_v4 = vadd.f32 %v1024_v22, %v1002_v15 }
 0x18e   :  { %v919_v32 = vadd.f32 %v3634_v37, %v893_v6 }
 0x18f   :  { %v784_v16 = vpop.permute.xlu0 %783  ;;  %v1060_v1 = vadd.f32 %v3470_v50, %v1035_v4  ;;  %v890_v50 = vmul.f32 %v3411_v18, %v3194_v31 }
 0x190   :  { %v793_v51 = vadd.f32 %v784_v16, %v760_v62  ;;  %v695_v9 = vpop.permute.xlu1 %694 }
 0x191   :  { %v703_v48 = vadd.f32 %v695_v9, %v3639_v23 }
 0x192   :  { %v818_v46 = vadd.f32 %v3478_v44, %v793_v51 }
 0x193   :  { %v935_v28 = vpop.permute.xlu0 %934  ;;  %v728_v53 = vadd.f32 %v4284_v7, %v703_v48 }
 0x194   :  { %v945_v63 = vadd.f32 %v935_v28, %v919_v32  ;;  %v1082_v12 = vpop.permute.xlu1 %1081 }
 0x195   :  { %v1093_v44 = vadd.f32 %v1082_v12, %v1060_v1 }
 0x196   :  { %v970_v41 = vadd.f32 %v3481_v57, %v945_v63 }
 0x197   :  { %v842_v37 = vpop.permute.xlu0 %841 }
 0x198   :  { %v851_v20 = vadd.f32 %v842_v37, %v818_v46  ;;  %v993_v11 = vpop.permute.xlu1 %992 }
 0x199   :  { %v1003_v2 = vadd.f32 %v993_v11, %v970_v41 }
 0x19b   :  { %v875_v43 = vpop.permute.xlu0 %874 }
 0x19c   :  { %v884_v8 = vadd.f32 %v875_v43, %v851_v20  ;;  %v1115_v39 = vpop.permute.xlu1 %1114 }
 0x19d   :  { %v1126_v23 = vadd.f32 %v1115_v39, %v1093_v44 }
 0x19e   :  { %v894_v54 = vadd.f32 %v890_v50, %v884_v8 }
 0x19f   :  { %v753_v59 = vpop.permute.xlu0 %752  ;;  %1137 = vst.msk [vmem:[#allocation2] sm:$0x1] %vm1135_vm3, %v1126_v23  ;;  %v1145_v6 = vrot.slane %v1126_v23, %v3683_v40  ;;  %v1184_v4 = vcombine.high %v1126_v23, %v1126_v23  ;;  %vm3796_vm3 = vcmp.ge.s32.totalorder %v1130_v19, 22 }
 0x1a0   :  { %v761_v57 = vadd.f32 %v753_v59, %v728_v53  ;;  %v786_v35 = vpop.permute.xlu1 %785  ;;  %vm1230_vm10 = vmand %vm3796_vm3, %vm3801_vm4  ;;  %vm3899_vm4 = vcmp.ge.s32.totalorder %v1130_v19, 69 }
 0x1a1   :  { %v1146_v16 = vcombine.high %v1145_v6, %v1145_v6  ;;  %v1191_v28 = vrot.slane %v1184_v4, %v3683_v40  ;;  %v1153_v44 = vrot.slane %v1145_v6, %v3683_v40 }
 0x1a2   :  { %v794_v33 = vadd.f32 %v786_v35, %v761_v57 }
 0x1a3   :  { %v1026_v14 = vpop.permute.xlu0 %1025  ;;  %v3692_v63 = vrot.slane %v1146_v16, %v3683_v40  ;;  %v3697_v37 = vrot.slane %v1191_v28, %v3683_v40  ;;  %v1206_v45 = vcombine.high %v1191_v28, %v1191_v28  ;;  %v1168_v35 = vcombine.high %v1153_v44, %v1153_v44  ;;  %v2413_v28 = vld [vmem:[#allocation10 + $0x60] sm:$0xff]   ;;  %v2423_v44 = vld [vmem:[#allocation10 + $0xf0] sm:$0xff]  }
 0x1a4   :  { %v1036_v55 = vadd.f32 %v1026_v14, %v1003_v2  ;;  %v819_v3 = vadd.f32 %v810_v21, %v794_v33  ;;  %v937_v31 = vpop.permute.xlu1 %936 }
 0x1a5   :  { %v1213_v26 = vrot.slane %v1206_v45, %v3683_v40  ;;  %v2424_v45 = vld [vmem:[#allocation10 + $0xb0] sm:$0xff]  }
 0x1a6   :  { %v1061_v5 = vadd.f32 %v3490_v29, %v1036_v55 }
 0x1a7   :  { %v911_v18 = vpop.permute.xlu0 %910 }
 0x1a8   :  { %v920_v60 = vadd.f32 %v911_v18, %v894_v54  ;;  %v844_v47 = vpop.permute.xlu1 %843  ;;  %v2398_v18 = vld [vmem:[#allocation10] sm:$0xff]  }
 0x1a9   :  { %v852_v13 = vadd.f32 %v844_v47, %v819_v3  ;;  %v1232_v47 = vcombine.high %v1213_v26, %v1213_v26 }
 0x1aa   :  { %v946_v24 = vadd.f32 %v937_v31, %v920_v60  ;;  %v2397_v31 = vld [vmem:[#allocation10 + $0x40] sm:$0xff]  }
 0x1ab   :  { %v1084_v0 = vpop.permute.xlu0 %1083  ;;  %2243 = vmatprep.subr.bf16.mxu0 %v2397_v31 }
 0x1ac   :  { %v971_v36 = vadd.f32 %v3499_v27, %v946_v24  ;;  %v1094_v52 = vadd.f32 %v1084_v0, %v1061_v5  ;;  %v877_v21 = vpop.permute.xlu1 %876  ;;  %v2399_v5 = vld [vmem:[#allocation10 + $0xc0] sm:$0xff]   ;;  %2244 = vmatpush3.bf16.msra.mxu0 %v2398_v18  ;;  %v2401_v0 = vld [vmem:[#allocation10 + $0x48] sm:$0xff]  }
 0x1ad   :  { %v885_v29 = vadd.f32 %v877_v21, %v852_v13  ;;  %2265 = vmatprep.subr.bf16.mxu1 %v2399_v5  ;;  %v2403_v13 = vld [vmem:[#allocation10 + $0xc8] sm:$0xff]   ;;  %2245 = vmatprep.subr.bf16.mxu0 %v2401_v0 }
 0x1ae   :  { %2266 = vmatpush3.bf16.msra.mxu1 %v2400_v42  ;;  %v2404_v21 = vld [vmem:[#allocation10 + $0x88] sm:$0xff]  }
 0x1af   :  { %v1117_v17 = vpop.permute.xlu0 %1116  ;;  %v895_v62 = vadd.f32 %v3467_v61, %v885_v29  ;;  %2267 = vmatprep.subr.bf16.mxu1 %v2403_v13  ;;  %v2405_v29 = vld [vmem:[#allocation10 + $0x50] sm:$0xff]  }
 0x1b0   :  { %v1127_v25 = vadd.f32 %v1117_v17, %v1094_v52  ;;  %v1028_v32 = vpop.permute.xlu1 %1027  ;;  %v1176_v52 = vcombine.high %v3692_v63, %v3692_v63 }
 0x1b2   :  { %v1247_v15 = vrot.slane %v1127_v25, %v3683_v40  ;;  %v1296_v23 = vcombine.high %v1127_v25, %v1127_v25  ;;  %v2406_v25 = vld [vmem:[#allocation10 + $0x10] sm:$0xff]   ;;  %2268 = vmatpush3.bf16.msra.mxu1 %v2404_v21 }
 0x1b3   :  { %v995_v22 = vpop.permute.xlu0 %994 }
 0x1b4   :  { %v1004_v51 = vadd.f32 %v995_v22, %v971_v36  ;;  %v1254_v1 = vrot.slane %v1247_v15, %v3683_v40  ;;  %v939_v46 = vpop.permute.xlu1 %938  ;;  %v1303_v58 = vrot.slane %v1296_v23, %v3683_v40  ;;  %v2402_v36 = vld [vmem:[#allocation10 + $0x8] sm:$0xff]   ;;  %v2427_v23 = vld [vmem:[#allocation10 + $0xf8] sm:$0xff]  }
 0x1b5   :  { %2246 = vmatpush3.bf16.msra.mxu0 %v2402_v36 }
 0x1b6   :  { %v1037_v27 = vadd.f32 %v1028_v32, %v1004_v51  ;;  %1255 = vrot.lane.b32.xlu0 %v1254_v1, %s2523_s14  ;;  %v1310_v34 = vrot.slane %v1303_v58, %v3683_v40  ;;  %v1318_v55 = vcombine.high %v1303_v58, %v1303_v58  ;;  %v2408_v32 = vld [vmem:[#allocation10 + $0x90] sm:$0xff]   ;;  %2247 = vmatprep.subr.bf16.mxu0 %v2405_v29  ;;  %v2409_v51 = vld [vmem:[#allocation10 + $0x58] sm:$0xff]  }
 0x1b7   :  { %v913_v9 = vpop.permute.xlu0 %912 }
 0x1b8   :  { %v921_v48 = vadd.f32 %v913_v9, %v895_v62  ;;  %v1062_v61 = vadd.f32 %v3504_v49, %v1037_v27  ;;  %v1119_v7 = vpop.permute.xlu1 %1118  ;;  %v1333_v3 = vcombine.high %v1310_v34, %v1310_v34  ;;  %v3724_v60 = vrot.slane %v1318_v55, %v3683_v40  ;;  %v2407_v62 = vld [vmem:[#allocation10 + $0xd0] sm:$0xff]   ;;  %v2411_v27 = vld [vmem:[#allocation10 + $0xd8] sm:$0xff]  }
 0x1b9   :  { %2269 = vmatprep.subr.bf16.mxu1 %v2407_v62  ;;  %2248 = vmatpush3.bf16.msra.mxu0 %v2406_v25  ;;  %v2430_v62 = vld [vmem:[#allocation10 + $0x108] sm:$0xff]  }
 0x1ba   :  { %v947_v41 = vadd.f32 %v939_v46, %v921_v48  ;;  %1161 = vrot.lane.b32.xlu0 %v3692_v63, %s2524_s28  ;;  %v1341_v6 = vcombine.high %v3724_v60, %v3724_v60  ;;  %2270 = vmatpush3.bf16.msra.mxu1 %v2408_v32  ;;  %v2412_v46 = vld [vmem:[#allocation10 + $0x98] sm:$0xff]   ;;  %v2414_v63 = vld [vmem:[#allocation10 + $0x20] sm:$0xff]  }
 0x1bb   :  { %v1086_v53 = vpop.permute.xlu0 %1085  ;;  %2249 = vmatprep.subr.bf16.mxu0 %v2409_v51  ;;  %2271 = vmatprep.subr.bf16.mxu1 %v2411_v27  ;;  %v2435_v51 = vld [vmem:[#allocation10 + $0x130] sm:$0xff]  }
 0x1bc   :  { %v1095_v12 = vadd.f32 %v1086_v53, %v1062_v61  ;;  %v972_v20 = vadd.f32 %v963_v30, %v947_v41  ;;  %v1030_v50 = vpop.permute.xlu1 %1029  ;;  %v1262_v30 = vcombine.high %v1247_v15, %v1247_v15  ;;  %v1224_v15 = vcombine.high %v3697_v37, %v3697_v37  ;;  %v2415_v61 = vld [vmem:[#allocation10 + $0xe0] sm:$0xff]   ;;  %v2417_v53 = vld [vmem:[#allocation10 + $0x68] sm:$0xff]  }
 0x1be   :  { %v3701_v11 = vadd.f32 %v1119_v7, %v1095_v12  ;;  %1199 = vrot.lane.b32.xlu0 %v3697_v37, %s2525_s5  ;;  %v1269_v14 = vrot.slane %v1262_v30, %v3683_v40  ;;  %2272 = vmatpush3.bf16.msra.mxu1 %v2412_v46  ;;  %v2416_v7 = vld [vmem:[#allocation10 + $0xa0] sm:$0xff]   ;;  %v2419_v37 = vld [vmem:[#allocation10 + $0xe8] sm:$0xff]   ;;  %v2425_v30 = vld [vmem:[#allocation10 + $0x78] sm:$0xff]  }
 0x1bf   :  { %v997_v43 = vpop.permute.xlu0 %996  ;;  %2273 = vmatprep.subr.bf16.mxu1 %v2415_v61  ;;  %v2441_v61 = vld [vmem:[%s4160_s7 + $0x20] sm:$0xff]  }
 0x1c0   :  { %v1359_v49 = vrot.slane %v3701_v11, %v3683_v40  ;;  %v1005_v8 = vadd.f32 %v997_v43, %v972_v20  ;;  %v1288_v33 = vcombine.high %v1269_v14, %v1269_v14  ;;  %v1405_v24 = vcombine.high %v3701_v11, %v3701_v11  ;;  %v1121_v20 = vpop.permute.xlu1 %1120  ;;  %v2418_v11 = vld [vmem:[#allocation10 + $0x28] sm:$0xff]  }
 0x1c2   :  { %v1374_v54 = vcombine.high %v1359_v49, %v1359_v49  ;;  %v1038_v39 = vadd.f32 %v1030_v50, %v1005_v8  ;;  %v3708_v59 = vrot.slane %v1359_v49, %v3683_v40  ;;  %v1412_v17 = vrot.slane %v1405_v24, %v3683_v40  ;;  %2274 = vmatpush3.bf16.msra.mxu1 %v2416_v7  ;;  %v2420_v8 = vld [vmem:[#allocation10 + $0xa8] sm:$0xff]   ;;  %v2421_v50 = vld [vmem:[#allocation10 + $0x70] sm:$0xff]  }
 0x1c3   :  { %v1088_v48 = vpop.permute.xlu0 %1087  ;;  %2275 = vmatprep.subr.bf16.mxu1 %v2419_v37  ;;  %v1499_v24 = vsub.s32 3, %v3680_v10  ;;  %v2446_v37 = vld [vmem:[%s4162_s9 + $0x8] sm:$0xff]  }
 0x1c4   :  { %v3712_v57 = vadd.f32 %v1054_v38, %v1038_v39  ;;  %1367 = vrot.lane.b32.xlu1 %v3708_v59, %s2526_s29  ;;  %v3716_v2 = vrot.slane %v1374_v54, %v3683_v40  ;;  %v1277_v38 = vcombine.high %v1254_v1, %v1254_v1  ;;  %v1430_v22 = vcombine.high %v1412_v17, %v1412_v17  ;;  %v2410_v1 = vld [vmem:[#allocation10 + $0x18] sm:$0xff]   ;;  %v2422_v54 = vld [vmem:[#allocation10 + $0x30] sm:$0xff]  }
 0x1c5   :  { %v1389_v16 = vcombine.high %v3708_v59, %v3708_v59  ;;  %v1419_v4 = vrot.slane %v1412_v17, %v3683_v40  ;;  %2250 = vmatpush3.bf16.msra.mxu0 %v2410_v1 }
 0x1c6   :  { %1382 = vrot.lane.b32.xlu0 %v3716_v2, %s2527_s30  ;;  %v1437_v9 = vrot.slane %v1430_v22, %v3683_v40  ;;  %v1096_v41 = vadd.f32 %v1088_v48, %v3712_v57  ;;  %2251 = vmatprep.subr.bf16.mxu0 %v2413_v28  ;;  %v1397_v49 = vcombine.high %v3716_v2, %v3716_v2  ;;  %v2426_v57 = vld [vmem:[#allocation10 + $0x38] sm:$0xff]   ;;  %v2439_v48 = vld [vmem:[%s4160_s7 + $0x10] sm:$0xff]  }
 0x1c7   :  { %v1445_v59 = vcombine.high %v1419_v4, %v1419_v4  ;;  %2276 = vmatpush3.bf16.msra.mxu1 %v2420_v8  ;;  %v2432_v22 = vld [vmem:[#allocation10 + $0x118] sm:$0xff]  }
 0x1c8   :  { %1169 = vrot.lane.b32.xlu1 %v1168_v35, %s2528_s12  ;;  %v1453_v12 = vcombine.high %v1437_v9, %v1437_v9  ;;  %v1129_v43 = vadd.f32 %v1121_v20, %v1096_v41  ;;  %2277 = vmatprep.subr.bf16.mxu1 %v2423_v44  ;;  %v2428_v35 = vld [vmem:[#allocation10 + $0xb8] sm:$0xff]   ;;  %v2442_v41 = vld [vmem:[%s4160_s7 + $0x28] sm:$0xff]  }
 0x1c9   :  { %2252 = vmatpush3.bf16.msra.mxu0 %v2414_v63  ;;  %v2437_v28 = vld [vmem:[%s4160_s7] sm:$0xff]   ;;  %v2440_v63 = vld [vmem:[%s4160_s7 + $0x18] sm:$0xff]  }
 0x1ca   :  { %1214 = vrot.lane.b32.xlu0 %v1213_v26, %s2529_s13  ;;  %2253 = vmatprep.subr.bf16.mxu0 %v2417_v53  ;;  %v1468_v39 = vrot.slane %v1129_v43, %v3683_v40 }
 0x1cb   :  { %2278 = vmatpush3.bf16.msra.mxu1 %v2424_v45 }
 0x1cc   :  { %1278 = vrot.lane.b32.xlu1 %v1277_v38, %s2530_s0  ;;  %v1475_v2 = vrot.slane %v1468_v39, %v3683_v40  ;;  %2279 = vmatprep.subr.bf16.mxu1 %v2427_v23 }
 0x1cd   :  { %2254 = vmatpush3.bf16.msra.mxu0 %v2418_v11 }
 0x1ce   :  { %1289 = vrot.lane.b32.xlu0 %v1288_v33, %s2531_s15  ;;  %2255 = vmatprep.subr.bf16.mxu0 %v2421_v50 }
 0x1cf   :  { %2280 = vmatpush3.bf16.msra.mxu1 %v2428_v35 }
 0x1d0   :  { %1270 = vrot.lane.b32.xlu1 %v1269_v14, %s2532_s16  ;;  %2330 = vmatprep.subr.bf16.mxu1 %v2521_v56 }
 0x1d1   :  { %2256 = vmatpush3.bf16.msra.mxu0 %v2422_v54 }
 0x1d2   :  { %1334 = vrot.lane.b32.xlu0 %v1333_v3, %s2533_s17  ;;  %2257 = vmatprep.subr.bf16.mxu0 %v2425_v30 }
 0x1d4   :  { %1311 = vrot.lane.b32.xlu1 %v1310_v34, %s2534_s3 }
 0x1d5   :  { %2258 = vmatpush3.bf16.msra.mxu0 %v2426_v57 }
 0x1d6   :  { %1233 = vrot.lane.b32.xlu0 %v1232_v47, %s2535_s18  ;;  %2310 = vmatprep.subr.bf16.mxu0 %v2521_v56  ;;  %v1495_v47 = vsub.s32 2, %v3680_v10 }
 0x1d8   :  { %1177 = vrot.lane.b32.xlu1 %v1176_v52, %s2536_s19 }
 0x1da   :  { %1342 = vrot.lane.b32.xlu0 %v1341_v6, %s2537_s20 }
 0x1dc   :  { %1225 = vrot.lane.b32.xlu1 %v1224_v15, %s2538_s21  ;;  %v2429_v15 = vld [vmem:[#allocation10 + $0x100] sm:$0xff]  }
 0x1de   :  { %1390 = vrot.lane.b32.xlu0 %v1389_v16, %s2539_s22  ;;  %v2433_v16 = vld [vmem:[#allocation10 + $0x120] sm:$0xff]  }
 0x1e0   :  { %1420 = vrot.lane.b32.xlu1 %v1419_v4, %s2540_s4  ;;  %v2434_v4 = vld [vmem:[#allocation10 + $0x128] sm:$0xff]  }
 0x1e2   :  { %1438 = vrot.lane.b32.xlu0 %v1437_v9, %s2541_s23 }
 0x1e4   :  { %1326 = vrot.lane.b32.xlu1 %v3724_v60, %s2542_s24 }
 0x1e6   :  { %1454 = vrot.lane.b32.xlu0 %v1453_v12, %s2543_s25  ;;  %v2445_v12 = vld [vmem:[%s4162_s9] sm:$0xff]  }
 0x1e8   :  { %1398 = vrot.lane.b32.xlu1 %v1397_v49, %s2544_s2 }
 0x1ec   :  { %1446 = vrot.lane.b32.xlu1 %v1445_v59, %s2545_s1 }
 0x1f0   :  { %1476 = vrot.lane.b32.xlu1 %v1475_v2, %s2546_s26 }
 0x228   :  { %v1256_v14 = vpop.permute.xlu0 %1255 }
 0x22c   :  { %v1162_v58 = vpop.permute.xlu0 %1161 }
 0x22d   :  { %1167 = vst.msk [vmem:[#allocation2] sm:$0x1] %vm1166_vm6, %v1162_v58  ;;  %vm3810_vm6 = vcmp.ge.s32.totalorder %v1130_v19, 47 }
 0x22e   :  { %vm1238_vm13 = vmand %vm3810_vm6, %vm3815_vm7  ;;  %vm3881_vm7 = vcmp.ge.s32.totalorder %v1130_v19, 44 }
 0x22f   :  { %vm1275_vm6 = vmand %vm3834_vm11, %vm3839_vm12  ;;  %vm3913_vm12 = vcmp.ge.s32.totalorder %v1130_v19, 94 }
 0x230   :  { %v1200_v40 = vpop.permute.xlu0 %1199 }
 0x236   :  { %v3751_v26 = vpop.permute.xlu1 %1367 }
 0x238   :  { %v3753_v38 = vpop.permute.xlu0 %1382 }
 0x23a   :  { %v1170_v34 = vpop.permute.xlu1 %1169 }
 0x23b   :  { %1175 = vst.msk [vmem:[#allocation2] sm:$0x1] %vm1174_vm9, %v1170_v34  ;;  %vm3825_vm9 = vcmp.lt.s32.totalorder %v1130_v19, 97 }
 0x23c   :  { %v1215_v33 = vpop.permute.xlu0 %1214 }
 0x23d   :  { %v1216_v13 = vrot.slane %v1215_v33, 7 }
 0x23e   :  { %v1279_v55 = vpop.permute.xlu1 %1278 }
 0x23f   :  { %v1218_v32 = vsel %vm1217_vm1, %v1216_v13, %v1215_v33  ;;  %v1280_v1 = vrot.slane %v1279_v55, 7  ;;  %vm3862_vm1 = vcmp.ge.s32.totalorder %v1130_v19, 19 }
 0x240   :  { %v1290_v3 = vpop.permute.xlu0 %1289 }
 0x242   :  { %v1271_v31 = vpop.permute.xlu1 %1270 }
 0x244   :  { %v3755_v18 = vpop.permute.xlu0 %1334 }
 0x246   :  { %v1312_v60 = vpop.permute.xlu1 %1311 }
 0x248   :  { %v1234_v52 = vpop.permute.xlu0 %1233 }
 0x24a   :  { %v1178_v6 = vpop.permute.xlu1 %1177 }
 0x24b   :  { %1183 = vst.msk [vmem:[#allocation2] sm:$0x1] %vm1182_vm0, %v1178_v6  ;;  %vm1260_vm0 = vmand %vm3820_vm8, %vm3825_vm9  ;;  %vm3886_vm8 = vcmp.lt.s32.totalorder %v1130_v19, 69 }
 0x24c   :  { %1205 = vst.msk [vmem:[#allocation2] sm:$0x1] %vm1204_vm2, %v1200_v40  ;;  %v1343_v27 = vpop.permute.xlu0 %1342  ;;  %vm3867_vm2 = vcmp.lt.s32.totalorder %v1130_v19, 44  ;;  %vm1286_vm9 = vmand %vm3848_vm14, %vm3853_vm15  ;;  %vm3923_vm14 = vcmp.ge.s32.totalorder %v1130_v19, 119  ;;  %vm3928_vm15 = vcmp.lt.s32.totalorder %v1130_v19, 144 }
 0x24d   :  { %1223 = vst.msk [vmem:[#allocation2] sm:$0x3] %vm1222_vm5, %v1218_v32  ;;  %vm1281_vm5 = vcmask 998400   ;;  %vm1294_vm3 = vmand %vm3862_vm1, %vm3867_vm2  ;;  %v1344_v43 = vrot.slane %v1343_v27, 7  ;;  %vm3956_vm1 = vcmp.ge.s32.totalorder %v1130_v19, 41  ;;  %vm3961_vm2 = vcmp.lt.s32.totalorder %v1130_v19, 66 }
 0x24e   :  { %v1226_v46 = vpop.permute.xlu1 %1225  ;;  %v1282_v7 = vsel %vm1281_vm5, %v1280_v1, %v1279_v55  ;;  %vm1316_vm11 = vmand %vm3881_vm7, %vm3886_vm8  ;;  %vm3942_vm5 = vcmp.ge.s32.totalorder %v1130_v19, 16  ;;  %vm1345_vm7 = vcmask 973824   ;;  %v2431_v32 = vld [vmem:[#allocation10 + $0x110] sm:$0xff]   ;;  %v1503_v1 = vsub.s32 4, %v3680_v10 }
 0x24f   :  { %1231 = vst.msk [vmem:[#allocation2 + $0x1] sm:$0x1] %vm1230_vm10, %v1226_v46  ;;  %vm3904_vm10 = vcmp.lt.s32.totalorder %v1130_v19, 94  ;;  %v1346_v57 = vsel %vm1345_vm7, %v1344_v43, %v1343_v27  ;;  %vm4013_vm7 = vcmp.ge.s32.totalorder %v1130_v19, 13  ;;  %v2436_v27 = vld [vmem:[#allocation10 + $0x138] sm:$0xff]  }
 0x250   :  { %1239 = vst.msk [vmem:[#allocation2 + $0x1] sm:$0x1] %vm1238_vm13, %v1234_v52  ;;  %vm3918_vm13 = vcmp.lt.s32.totalorder %v1130_v19, 119  ;;  %v1391_v49 = vpop.permute.xlu0 %1390  ;;  %v1595_v43 = vld [vmem:[%s4159_s6] sm:$0x1]  ;;  %v2448_v55 = vld [vmem:[%s4162_s9 + $0x18] sm:$0xff]  }
 0x251   :  { %1261 = vst.msk [vmem:[#allocation2 + $0x1] sm:$0x1] %vm1260_vm0, %v1256_v14  ;;  %vm1331_vm0 = vmand %vm3899_vm4, %vm3904_vm10  ;;  %vm3975_vm4 = vcmp.lt.s32.totalorder %v1130_v19, 91 }
 0x252   :  { %1276 = vst.msk [vmem:[#allocation2 + $0x1] sm:$0x1] %vm1275_vm6, %v1271_v31  ;;  %v1421_v53 = vpop.permute.xlu1 %1420  ;;  %vm3947_vm6 = vcmp.lt.s32.totalorder %v1130_v19, 41  ;;  %vm1339_vm8 = vmand %vm3913_vm12, %vm3918_vm13  ;;  %vm3989_vm12 = vcmp.lt.s32.totalorder %v1130_v19, 116  ;;  %vm1423_vm13 = vcmask 949248  }
 0x253   :  { %1287 = vst.msk [vmem:[#allocation2 + $0x1] sm:$0x3] %vm1286_vm9, %v1282_v7  ;;  %vm1350_vm9 = vmand %vm3923_vm14, %vm3928_vm15  ;;  %vm3999_vm14 = vcmp.ge.s32.totalorder %v1130_v19, 116  ;;  %vm4004_vm15 = vcmp.lt.s32.totalorder %v1130_v19, 141  ;;  %v1422_v14 = vrot.slane %v1421_v53, 7  ;;  %v2443_v7 = vld [vmem:[%s4160_s7 + $0x30] sm:$0xff]  }
 0x254   :  { %1295 = vst.msk [vmem:[#allocation2 + $0x2] sm:$0x1] %vm1294_vm3, %v1290_v3  ;;  %vm3970_vm3 = vcmp.ge.s32.totalorder %v1130_v19, 66  ;;  %vm1372_vm10 = vmand %vm3942_vm5, %vm3947_vm6  ;;  %v1439_v34 = vpop.permute.xlu0 %1438  ;;  %vm4053_vm6 = vcmp.ge.s32.totalorder %v1130_v19, 63  ;;  %v1974_v3 = vld [vmem:[%s4161_s8] sm:$0x1] }
 0x255   :  { %1317 = vst.msk [vmem:[#allocation2 + $0x2] sm:$0x1] %vm1316_vm11, %v1312_v60  ;;  %vm3984_vm11 = vcmp.ge.s32.totalorder %v1130_v19, 91  ;;  %vm4365_vm5 = vmand %vm3956_vm1, %vm3961_vm2  ;;  %vm1479_vm2 = vcmp.ge.s32.totalorder %v1130_v19, 88  ;;  %v1491_v60 = vsub.s32 1, %v3680_v10 }
 0x256   :  { %v1327_v39 = vpop.permute.xlu1 %1326 }
 0x257   :  { %1332 = vst.msk [vmem:[#allocation2 + $0x2] sm:$0x1] %vm1331_vm0, %v1327_v39  ;;  %vm1395_vm0 = vmand %vm3970_vm3, %vm3975_vm4  ;;  %vm4033_vm3 = vcmp.ge.s32.totalorder %v1130_v19, 38  ;;  %vm4038_vm4 = vcmp.lt.s32.totalorder %v1130_v19, 63 }
 0x258   :  { %1340 = vst.msk [vmem:[#allocation2 + $0x2] sm:$0x1] %vm1339_vm8, %v3755_v18  ;;  %vm4018_vm8 = vcmp.lt.s32.totalorder %v1130_v19, 38  ;;  %v1424_v18 = vsel %vm1423_vm13, %v1422_v14, %v1421_v53  ;;  %vm1451_vm1 = vmand %vm4033_vm3, %vm4038_vm4  ;;  %v1455_v5 = vpop.permute.xlu0 %1454  ;;  %v2444_v53 = vld [vmem:[%s4160_s7 + $0x38] sm:$0xff]  }
 0x259   :  { %1351 = vst.msk [vmem:[#allocation2 + $0x2] sm:$0x3] %vm1350_vm9, %v1346_v57  ;;  %vm1403_vm9 = vmand %vm3984_vm11, %vm3989_vm12 }
 0x25a   :  { %v1399_v33 = vpop.permute.xlu1 %1398  ;;  %1373 = vst.msk [vmem:[#allocation2 + $0x3] sm:$0x1] %vm1372_vm10, %v3751_v26  ;;  %vm1428_vm11 = vmand %vm3999_vm14, %vm4004_vm15  ;;  %vm4058_vm10 = vcmp.lt.s32.totalorder %v1130_v19, 88  ;;  %vm1480_vm14 = vcmp.lt.s32.totalorder %v1130_v19, 113  ;;  %v1487_v19 = vsub.s32 0, %v3680_v10  ;;  %v2438_v10 = vld [vmem:[%s4160_s7 + $0x8] sm:$0xff]  }
 0x25b   :  { %1388 = vst.msk [vmem:[#allocation2 + $0x3] sm:$0x1] %vm4365_vm5, %v3753_v38  ;;  %vm1443_vm12 = vmand %vm4013_vm7, %vm4018_vm8  ;;  %vm2098_vm7 = vcmask 523264  }
 0x25c   :  { %1396 = vst.msk [vmem:[#allocation2 + $0x3] sm:$0x1] %vm1395_vm0, %v1391_v49  ;;  %vm1459_vm15 = vmand %vm4053_vm6, %vm4058_vm10  ;;  %vm2547_vm0 = vmmov 0  }
 0x25d   :  { %1404 = vst.msk [vmem:[#allocation2 + $0x3] sm:$0x1] %vm1403_vm9, %v1399_v33  ;;  %vm1481_vm13 = vmand %vm1479_vm2, %vm1480_vm14  ;;  %v2447_v33 = vld [vmem:[%s4162_s9 + $0x10] sm:$0xff]  }
 0x25e   :  { %1429 = vst.msk [vmem:[#allocation2 + $0x3] sm:$0x3] %vm1428_vm11, %v1424_v18  ;;  %v1447_v38 = vpop.permute.xlu1 %1446 }
 0x25f   :  { %1444 = vst.msk [vmem:[#allocation2 + $0x4] sm:$0x1] %vm1443_vm12, %v1439_v34 }
 0x260   :  { %1452 = vst.msk [vmem:[#allocation2 + $0x4] sm:$0x1] %vm1451_vm1, %v1447_v38 }
 0x261   :  { %1460 = vst.msk [vmem:[#allocation2 + $0x4] sm:$0x1] %vm1459_vm15, %v1455_v5 }
 0x262   :  { %v1477_v42 = vpop.permute.xlu1 %1476 }
 0x263   :  { %1482 = vst.msk [vmem:[#allocation2 + $0x4] sm:$0x1] %vm1481_vm13, %v1477_v42 }
 0x26a   :  { %v1483_v0 = vld [vmem:[#allocation2] sm:$0x1f] }
 0x26b   :  { %v1492_v36 = vrot.slane %v1483_v0, %v1491_v60  ;;  %v1500_v13 = vrot.slane %v1483_v0, %v1499_v24  ;;  %v1488_v52 = vrot.slane %v1483_v0, %v1487_v19  ;;  %v1496_v21 = vrot.slane %v1483_v0, %v1495_v47  ;;  %v2073_v24 = vld [vmem:[%s4163_s10] sm:$0x1] }
 0x26c   :  { %v1504_v46 = vrot.slane %v1483_v0, %v1503_v1 }
 0x26d   :  { %v1511_v17 = vpack.c.bf16 %v1492_v36, %v1492_v36  ;;  %v1513_v6 = vpack.c.bf16 %v1500_v13, %v1500_v13  ;;  %v1510_v29 = vpack.c.bf16 %v1488_v52, %v1488_v52  ;;  %v1512_v25 = vpack.c.bf16 %v1496_v21, %v1496_v21 }
 0x26e   :  { %v1514_v9 = vpack.c.bf16 %v1504_v46, %v1504_v46 }
 0x26f   :  { %1868 = vmatprep.mubr.bf16.mxu0 %v1511_v17  ;;  %1908 = vmatprep.mubr.bf16.mxu1 %v1513_v6 }
 0x270   :  { %1869 = vmatmul.mubr.bf16.vlgmr.msra.gmra.mrb[0].mxu0 %v1510_v29  ;;  %1909 = vmatmul.mubr.bf16.vlgmr.msra.gmra.mrb[0].mxu1 %v1512_v25 }
 0x271   :  { %2311 = vmatpush3.bf16.msra.mxu0 %v2429_v15  ;;  %2326 = vmatprep.mubr.msk.bf16.mxu0 %vm2547_vm0, %v2521_v56 }
 0x272   :  { %2312 = vmatprep.subr.bf16.mxu0 %v2521_v56  ;;  %2346 = vmatprep.mubr.msk.bf16.mxu1 %vm2547_vm0, %v2521_v56 }
 0x273   :  { %2331 = vmatpush3.bf16.msra.mxu1 %v2437_v28 }
 0x274   :  { %2332 = vmatprep.subr.bf16.mxu1 %v2521_v56 }
 0x275   :  { %2313 = vmatpush3.bf16.msra.mxu0 %v2430_v62 }
 0x276   :  { %2314 = vmatprep.subr.bf16.mxu0 %v2521_v56 }
 0x277   :  { %2333 = vmatpush3.bf16.msra.mxu1 %v2438_v10 }
 0x278   :  { %2334 = vmatprep.subr.bf16.mxu1 %v2521_v56 }
 0x279   :  { %2315 = vmatpush3.bf16.msra.mxu0 %v2431_v32 }
 0x27a   :  { %2316 = vmatprep.subr.bf16.mxu0 %v2521_v56 }
 0x27b   :  { %2335 = vmatpush3.bf16.msra.mxu1 %v2439_v48 }
 0x27c   :  { %2336 = vmatprep.subr.bf16.mxu1 %v2521_v56 }
 0x27d   :  { %2317 = vmatpush3.bf16.msra.mxu0 %v2432_v22 }
 0x27e   :  { %2318 = vmatprep.subr.bf16.mxu0 %v2521_v56 }
 0x27f   :  { %2337 = vmatpush3.bf16.msra.mxu1 %v2440_v63 }
 0x280   :  { %2338 = vmatprep.subr.bf16.mxu1 %v2521_v56 }
 0x281   :  { %2319 = vmatpush3.bf16.msra.mxu0 %v2433_v16 }
 0x282   :  { %2320 = vmatprep.subr.bf16.mxu0 %v2521_v56 }
 0x283   :  { %2339 = vmatpush3.bf16.msra.mxu1 %v2441_v61 }
 0x284   :  { %2340 = vmatprep.subr.bf16.mxu1 %v2521_v56 }
 0x285   :  { %2321 = vmatpush3.bf16.msra.mxu0 %v2434_v4 }
 0x286   :  { %2322 = vmatprep.subr.bf16.mxu0 %v2521_v56 }
 0x287   :  { %2341 = vmatpush3.bf16.msra.mxu1 %v2442_v41 }
 0x288   :  { %2342 = vmatprep.subr.bf16.mxu1 %v2521_v56 }
 0x289   :  { %2323 = vmatpush3.bf16.msra.mxu0 %v2435_v51 }
 0x28a   :  { %2324 = vmatprep.subr.bf16.mxu0 %v2521_v56 }
 0x28b   :  { %2343 = vmatpush3.bf16.msra.mxu1 %v2443_v7 }
 0x28c   :  { %2344 = vmatprep.subr.bf16.mxu1 %v2521_v56 }
 0x28d   :  { %2325 = vmatpush3.bf16.msra.mxu0 %v2436_v27 }
 0x28e   :  { %2350 = vmatprep.subr.bf16.mxu0 %v2521_v56 }
 0x28f   :  { %2345 = vmatpush3.bf16.msra.mxu1 %v2444_v53 }
 0x290   :  { %2327 = vmatmul.mubr.bf16.vlgmr.msra.gmra.mrb[4].mxu0 %v1514_v9 }
 0x291   :  { %2358 = vmatprep.mubr.msk.bf16.mxu0 %vm2547_vm0, %v2521_v56  ;;  %2351 = vmatpush3.bf16.msra.mxu0 %v2445_v12 }
 0x292   :  { %2352 = vmatprep.subr.bf16.mxu0 %v2521_v56 }
 0x295   :  { %2353 = vmatpush3.bf16.msra.mxu0 %v2446_v37 }
 0x296   :  { %2354 = vmatprep.subr.bf16.mxu0 %v2521_v56 }
 0x299   :  { %2355 = vmatpush3.bf16.msra.mxu0 %v2447_v33 }
 0x29a   :  { %2356 = vmatprep.subr.bf16.mxu0 %v2521_v56 }
 0x29d   :  { %2357 = vmatpush3.bf16.msra.mxu0 %v2448_v55 }
 0x343   :  { %v2259_v20 = vpop.f32.mrb[0].mxu0  ;;  %v2281_v11 = vpop.f32.mrb[0].mxu1 }
 0x344   :  { %v2260_v49 = vpop.f32.mrb[1].mxu0  ;;  %v2282_v8 = vpop.f32.mrb[1].mxu1 }
 0x345   :  { %v2261_v50 = vadd.f32 %v2260_v49, %v2259_v20  ;;  %v2283_v44 = vadd.f32 %v2282_v8, %v2281_v11  ;;  %v2262_v54 = vpop.f32.mrb[2].mxu0  ;;  %v2284_v39 = vpop.f32.mrb[2].mxu1 }
 0x346   :  { %v2263_v59 = vpop.f32.mrb[3].mxu0  ;;  %v2285_v45 = vpop.f32.mrb[3].mxu1 }
 0x347   :  { %v1871_v30 = vadd.f32 %v2261_v50, %v1595_v43 }
 0x349   :  { %v1911_v23 = vadd.f32 %v2283_v44, %v1871_v30 }
 0x363   :  { %v1950_v57 = vpop.f32.mrb[4].mxu0 }
 0x364   :  { %v1951_v2 = vadd.f32 %v1950_v57, %v1911_v23  ;;  %v2328_v35 = vpop.f32.mrb[5].mxu0 }
 0x365   :  { %v1953_v14 = vpop.f32.mrb[6].mxu0 }
 0x366   :  { %v1956_v58 = vmax.f32 %v1951_v2, 0.0  ;;  %v2329_v40 = vpop.f32.mrb[7].mxu0 }
 0x368   :  { %v1957_v34 = vpack.c.bf16 %v1956_v58, %v1956_v58 }
 0x36a   :  { %2347 = vmatmul.mubr.bf16.vlgmr.msra.gmra.mrb[4].mxu1 %v1957_v34 }
 0x43d   :  { %v2057_v26 = vpop.f32.mrb[4].mxu1 }
 0x43e   :  { %v2058_v31 = vadd.f32 %v2057_v26, %v1974_v3  ;;  %v2348_v18 = vpop.f32.mrb[5].mxu1 }
 0x43f   :  { %v2060_v38 = vpop.f32.mrb[6].mxu1 }
 0x440   :  { %v2063_v5 = vmax.f32 %v2058_v31, 0.0  ;;  %v2349_v42 = vpop.f32.mrb[7].mxu1 }
 0x442   :  { %v2064_v60 = vpack.c.bf16 %v2063_v5, %v2063_v5 }
 0x444   :  { %2359 = vmatmul.mubr.msk.bf16.vlgmr.msra.gmra.mrb[8].mxu0 %vm2098_vm7, %v2064_v60 }
 0x517   :  { %v2136_v19 = vpop.f32.mrb[8].mxu0 }
 0x518   :  { %v2137_v56 = vadd.f32 %v2136_v19, %v2073_v24  ;;  %v2360_v47 = vpop.f32.mrb[9].mxu0 }
 0x519   :  { %v2139_v0 = vpop.f32.mrb[10].mxu0 }
 0x51a   :  { %v2142_v36 = vmax.f32 %v2137_v56, 0.0  ;;  %v2361_v13 = vpop.f32.mrb[11].mxu0 }
 0x51c   :  { %2143 = vst [vmem:[%s4164_s11] sm:$0x1] %v2142_v36 }
 0x51d   :  { %2148 = vsyncpa [#allocation5], 1 }
 0x51e   :  { %2149 = vsyncpa [#allocation6], 1 }
 0x51f   :  { %2150 = vsyncpa [#allocation8], 1 }

</bundles_post_ra>
